<compile_context>
chip_gen: v5e
topology: v5e:2x2
jax: 0.10.0
libtpu: 0.0.40
codegen_flags: <defaults>
</compile_context>

<pallas_src>
import jax
import jax.numpy as jnp
from jax.experimental import pallas as pl
from jax.experimental.pallas import tpu as pltpu


# ---------------------------------------------------------------------------
# Pallas kernels (hot path: MXU matmuls, bias, ReLU, max-pool reduction)
# ---------------------------------------------------------------------------
def conv_relu_pool_kernel(taps_ref, w_ref, b_ref, o_ref):
    """Fused 3x3 conv (taps folded into K) + 2x2 max-pool + bias + ReLU.

    taps_ref: (P2, TM, K2*Cin) bf16   P2 = 2*2 pool offsets, TM = M tile
    w_ref:    (K2*Cin, Cout)   bf16   resident across the M grid
    b_ref:    (1, Cout)        f32    resident
    o_ref:    (TM, Cout)       bf16
    """
    w = w_ref[...]                                     # load once, reuse 4x
    pooled = jnp.dot(taps_ref[0], w, preferred_element_type=jnp.float32)
    for off in range(1, taps_ref.shape[0]):            # remaining pool offsets
        acc = jnp.dot(taps_ref[off], w, preferred_element_type=jnp.float32)
        pooled = jnp.maximum(pooled, acc)
    # bias + ReLU hoisted out of the pool loop (max/relu commute with +b).
    o_ref[...] = jnp.maximum(pooled + b_ref[...], 0.0).astype(o_ref.dtype)


def mlp_kernel(x_ref, w1_ref, b1_ref, w2_ref, b2_ref, o_ref):
    """Fused fc1 + ReLU + fc2 (weights resident, tiled over batch)."""
    h = jnp.dot(x_ref[...], w1_ref[...],
                preferred_element_type=jnp.float32) + b1_ref[...]
    h = jnp.maximum(h, 0.0).astype(w2_ref.dtype)
    o_ref[...] = (jnp.dot(h, w2_ref[...], preferred_element_type=jnp.float32)
                  + b2_ref[...]).astype(o_ref.dtype)


# ---------------------------------------------------------------------------
# pallas_call wrappers
# ---------------------------------------------------------------------------
_COMPILER_PARAMS = pltpu.CompilerParams(
    dimension_semantics=("parallel",),       # shard M / batch across TCs (v7x)
    vmem_limit_bytes=32 * 1024 * 1024,       # safe on v5e / v6e / v7x
)


def _pick_tile(m, cap):
    """Largest tile <= cap that evenly divides m (sublane-friendly)."""
    if m <= cap:
        return m
    t = (cap // 8) * 8
    while t >= 8:
        if m % t == 0:
            return t
        t -= 8
    return m


def conv_relu_pool(taps, w, b):
    p2, m, k = taps.shape
    cout = w.shape[-1]
    tm = _pick_tile(m, 1024)
    return pl.pallas_call(
        conv_relu_pool_kernel,
        out_shape=jax.ShapeDtypeStruct((m, cout), jnp.bfloat16),
        grid=(m // tm,),
        in_specs=[
            pl.BlockSpec((p2, tm, k), lambda i: (0, i, 0)),   # taps, M-tiled
            pl.BlockSpec((k, cout), lambda i: (0, 0)),        # resident weights
            pl.BlockSpec((1, cout), lambda i: (0, 0)),        # resident bias
        ],
        out_specs=pl.BlockSpec((tm, cout), lambda i: (i, 0)),
        compiler_params=_COMPILER_PARAMS,
    )(taps, w, b)


def mlp(x, w1, b1, w2, b2):
    n, f = x.shape
    hdim = w1.shape[-1]
    out_dim = w2.shape[-1]
    tb = _pick_tile(n, 256)
    return pl.pallas_call(
        mlp_kernel,
        out_shape=jax.ShapeDtypeStruct((n, out_dim), jnp.float32),
        grid=(n // tb,),
        in_specs=[
            pl.BlockSpec((tb, f), lambda i: (i, 0)),
            pl.BlockSpec((f, hdim), lambda i: (0, 0)),        # fc1_w resident
            pl.BlockSpec((1, hdim), lambda i: (0, 0)),
            pl.BlockSpec((hdim, out_dim), lambda i: (0, 0)),  # fc2_w resident
            pl.BlockSpec((1, out_dim), lambda i: (0, 0)),
        ],
        out_specs=pl.BlockSpec((tb, out_dim), lambda i: (i, 0)),
        compiler_params=_COMPILER_PARAMS,
    )(x, w1, b1, w2, b2)


# ---------------------------------------------------------------------------
# Glue: padding / strided slicing / channel folding (data movement only)
# ---------------------------------------------------------------------------
def make_conv_pool_taps(x_nhwc, k=3, pad=1, pool=2, dtype=jnp.bfloat16):
    """For each pool offset, concatenate the 9 strided conv-tap slices along
    the channel dim so the conv reduces to one (M, 9*Cin) @ (9*Cin, Cout)."""
    n, h, w, c = x_nhwc.shape
    ho, wo = h // pool, w // pool
    xp = jnp.pad(x_nhwc, ((0, 0), (pad, pad), (pad, pad), (0, 0))).astype(dtype)
    per_offset = []
    for dh in range(pool):
        for dw in range(pool):
            taps = []
            for kh in range(k):
                for kw in range(k):
                    a, b = dh + kh, dw + kw
                    t = xp[:, a:a + pool * ho:pool, b:b + pool * wo:pool, :]
                    taps.append(t.reshape(n * ho * wo, c))
            per_offset.append(jnp.concatenate(taps, axis=-1))  # (M, 9*Cin)
    return jnp.stack(per_offset, axis=0)                       # (4, M, 9*Cin)


def init_params(key, in_channels, hw):
    h, w = hw
    flatten_size = 32 * h * w // 4 ** 2
    ks = jax.random.split(key, 8)
    s = 0.05
    # Conv weights stored in (kh*3+kw, Cin, Cout) layout (the unrolled
    # transpose of PyTorch's (Cout, Cin, 3, 3)); fc1_w rows in PyTorch's
    # NCHW-flatten order.
    params = {
        "conv1_w": s * jax.random.normal(ks[0], (9, in_channels, 16), jnp.float32),
        "conv1_b": s * jax.random.normal(ks[1], (1, 16), jnp.float32),
        "conv2_w": s * jax.random.normal(ks[2], (9, 16, 32), jnp.float32),
        "conv2_b": s * jax.random.normal(ks[3], (1, 32), jnp.float32),
        "fc1_w":   s * jax.random.normal(ks[4], (flatten_size, 512), jnp.float32),
        "fc1_b":   s * jax.random.normal(ks[5], (1, 512), jnp.float32),
        "fc2_w":   s * jax.random.normal(ks[6], (512, 2), jnp.float32),
        "fc2_b":   s * jax.random.normal(ks[7], (1, 2), jnp.float32),
    }
    return params, flatten_size


def prepare_pallas_params(params, h2, w2):
    """One-time repack: fold conv weights over (tap, Cin), cast to bf16, and
    permute fc1 rows from NCHW-flatten to the NHWC-flatten the kernels emit."""
    cin = params["conv1_w"].shape[1]
    c2 = params["conv2_w"].shape[2]
    fc1_w = params["fc1_w"]
    hidden = fc1_w.shape[1]
    fc1_w_nhwc = jnp.transpose(
        fc1_w.reshape(c2, h2, w2, hidden), (1, 2, 0, 3)
    ).reshape(h2 * w2 * c2, hidden)
    bf16 = jnp.bfloat16
    return {
        "conv1_wf": params["conv1_w"].reshape(9 * cin, 16).astype(bf16),
        "conv1_b":  params["conv1_b"].astype(jnp.float32),
        "conv2_wf": params["conv2_w"].reshape(9 * 16, 32).astype(bf16),
        "conv2_b":  params["conv2_b"].astype(jnp.float32),
        "fc1_wf":   fc1_w_nhwc.astype(bf16),
        "fc1_b":    params["fc1_b"].astype(jnp.float32),
        "fc2_wf":   params["fc2_w"].astype(bf16),
        "fc2_b":    params["fc2_b"].astype(jnp.float32),
    }


def simple_cnn_forward(x_nchw, p):
    n, _, h, w = x_nchw.shape
    x = jnp.transpose(x_nchw, (0, 2, 3, 1))                  # NCHW -> NHWC
    # block 1: conv1 + ReLU + maxpool2x2
    t1 = make_conv_pool_taps(x)
    y1 = conv_relu_pool(t1, p["conv1_wf"], p["conv1_b"])
    h1, w1 = h // 2, w // 2
    x1 = y1.reshape(n, h1, w1, 16)
    # block 2: conv2 + ReLU + maxpool2x2
    t2 = make_conv_pool_taps(x1)
    y2 = conv_relu_pool(t2, p["conv2_wf"], p["conv2_b"])
    h2, w2 = h1 // 2, w1 // 2
    # NHWC flatten (fc1 rows were pre-permuted at init -> no runtime transpose)
    feat = y2.reshape(n, h2 * w2 * 32)
    # fc1 + ReLU + fc2 (fused kernel)
    return mlp(feat, p["fc1_wf"], p["fc1_b"], p["fc2_wf"], p["fc2_b"])


# ---------------------------------------------------------------------------
# Pure-JAX reference (PyTorch semantics) for a correctness sanity check
# ---------------------------------------------------------------------------
def reference_forward(x_nchw, params, flatten_size):
    def conv(x, w9, b):
        cin, cout = w9.shape[1], w9.shape[2]
        w = w9.reshape(3, 3, cin, cout)                      # HWIO
        y = jax.lax.conv_general_dilated(
            x, w, window_strides=(1, 1), padding="SAME",
            dimension_numbers=("NCHW", "HWIO", "NCHW"))
        return y + b.reshape(1, cout, 1, 1)

    def pool(x):
        return jax.lax.reduce_window(x, -jnp.inf, jax.lax.max,
                                     (1, 1, 2, 2), (1, 1, 2, 2), "VALID")

    x = pool(jax.nn.relu(conv(x_nchw, params["conv1_w"], params["conv1_b"])))
    x = pool(jax.nn.relu(conv(x, params["conv2_w"], params["conv2_b"])))
    x = x.reshape(x.shape[0], flatten_size)                  # NCHW flatten
    x = jax.nn.relu(x @ params["fc1_w"] + params["fc1_b"])
    return x @ params["fc2_w"] + params["fc2_b"]


if __name__ == "__main__":
    key = jax.random.PRNGKey(0)
    k_x, k_p = jax.random.split(key)

    N, CIN, H, W = 2, 3, 16, 16          # small shapes consistent with the module
    x = jax.random.normal(k_x, (N, CIN, H, W), jnp.float32)
    params, flatten_size = init_params(k_p, CIN, (H, W))
    pparams = prepare_pallas_params(params, H // 4, W // 4)

    fwd = jax.jit(simple_cnn_forward)
    out = jax.block_until_ready(fwd(x, pparams))

    ref = reference_forward(x, params, flatten_size)
    assert out.shape == (N, 2)
    assert jnp.allclose(out, ref, rtol=2e-2, atol=2e-2), \
        float(jnp.max(jnp.abs(out - ref)))
    print("KERNEL_OK")
</pallas_src>

<mosaic_0001>
module attributes {stable_mosaic.version = 11 : i64} {
  func.func @conv_relu_pool_kernel(%arg0: i32, %arg1: memref<4x128x27xbf16, #tpu.memory_space<vmem>>, %arg2: memref<27x16xbf16, #tpu.memory_space<vmem>>, %arg3: memref<1x16xf32, #tpu.memory_space<vmem>>, %arg4: memref<128x16xbf16, #tpu.memory_space<vmem>>) attributes {dimension_semantics = [#tpu.dimension_semantics<parallel>], iteration_bounds = array<i64: 1>, scalar_prefetch = 0 : i64, scratch_operands = 0 : i64, tpu.core_type = #tpu.core_type<tc>, window_params = [{transform_indices = @transform_0, window_bounds = array<i64: 4, 128, 27>}, {pipeline_mode = #tpu.pipeline_mode<synchronous>, transform_indices = @transform_1, window_bounds = array<i64: 27, 16>}, {pipeline_mode = #tpu.pipeline_mode<synchronous>, transform_indices = @transform_2, window_bounds = array<i64: 1, 16>}, {transform_indices = @transform_3, window_bounds = array<i64: 128, 16>}]} {
    %c0 = arith.constant 0 : index
    %c0_0 = arith.constant 0 : index
    %0 = vector.load %arg2[%c0, %c0_0] : memref<27x16xbf16, #tpu.memory_space<vmem>>, vector<27x16xbf16>
    %c0_1 = arith.constant 0 : index
    %c0_2 = arith.constant 0 : index
    %c0_3 = arith.constant 0 : index
    %1 = vector.load %arg1[%c0_1, %c0_2, %c0_3] : memref<4x128x27xbf16, #tpu.memory_space<vmem>>, vector<1x128x27xbf16>
    %2 = vector.shape_cast %1 : vector<1x128x27xbf16> to vector<128x27xbf16>
    %cst = arith.constant dense<0.000000e+00> : vector<128x16xf32>
    %3 = tpu.matmul %2, %0, %cst {dimension_numbers = #tpu.dot_dimension_numbers<[1], [0], [0], [1], [0, 0, 1, 1], [], []>} : vector<128x27xbf16>, vector<27x16xbf16>, vector<128x16xf32> -> vector<128x16xf32>
    %c1 = arith.constant 1 : index
    %c0_4 = arith.constant 0 : index
    %c0_5 = arith.constant 0 : index
    %4 = vector.load %arg1[%c1, %c0_4, %c0_5] : memref<4x128x27xbf16, #tpu.memory_space<vmem>>, vector<1x128x27xbf16>
    %5 = vector.shape_cast %4 : vector<1x128x27xbf16> to vector<128x27xbf16>
    %cst_6 = arith.constant dense<0.000000e+00> : vector<128x16xf32>
    %6 = tpu.matmul %5, %0, %cst_6 {dimension_numbers = #tpu.dot_dimension_numbers<[1], [0], [0], [1], [0, 0, 1, 1], [], []>} : vector<128x27xbf16>, vector<27x16xbf16>, vector<128x16xf32> -> vector<128x16xf32>
    %7 = arith.maximumf %3, %6 : vector<128x16xf32>
    %c2 = arith.constant 2 : index
    %c0_7 = arith.constant 0 : index
    %c0_8 = arith.constant 0 : index
    %8 = vector.load %arg1[%c2, %c0_7, %c0_8] : memref<4x128x27xbf16, #tpu.memory_space<vmem>>, vector<1x128x27xbf16>
    %9 = vector.shape_cast %8 : vector<1x128x27xbf16> to vector<128x27xbf16>
    %cst_9 = arith.constant dense<0.000000e+00> : vector<128x16xf32>
    %10 = tpu.matmul %9, %0, %cst_9 {dimension_numbers = #tpu.dot_dimension_numbers<[1], [0], [0], [1], [0, 0, 1, 1], [], []>} : vector<128x27xbf16>, vector<27x16xbf16>, vector<128x16xf32> -> vector<128x16xf32>
    %11 = arith.maximumf %7, %10 : vector<128x16xf32>
    %c3 = arith.constant 3 : index
    %c0_10 = arith.constant 0 : index
    %c0_11 = arith.constant 0 : index
    %12 = vector.load %arg1[%c3, %c0_10, %c0_11] : memref<4x128x27xbf16, #tpu.memory_space<vmem>>, vector<1x128x27xbf16>
    %13 = vector.shape_cast %12 : vector<1x128x27xbf16> to vector<128x27xbf16>
    %cst_12 = arith.constant dense<0.000000e+00> : vector<128x16xf32>
    %14 = tpu.matmul %13, %0, %cst_12 {dimension_numbers = #tpu.dot_dimension_numbers<[1], [0], [0], [1], [0, 0, 1, 1], [], []>} : vector<128x27xbf16>, vector<27x16xbf16>, vector<128x16xf32> -> vector<128x16xf32>
    %15 = arith.maximumf %11, %14 : vector<128x16xf32>
    %c0_13 = arith.constant 0 : index
    %c0_14 = arith.constant 0 : index
    %16 = vector.load %arg3[%c0_13, %c0_14] : memref<1x16xf32, #tpu.memory_space<vmem>>, vector<1x16xf32>
    %17 = vector.broadcast %16 : vector<1x16xf32> to vector<128x16xf32>
    %18 = arith.addf %15, %17 : vector<128x16xf32>
    %cst_15 = arith.constant 0.000000e+00 : f32
    %19 = vector.broadcast %cst_15 : f32 to vector<128x16xf32>
    %20 = arith.maximumf %18, %19 : vector<128x16xf32>
    %21 = arith.truncf %20 : vector<128x16xf32> to vector<128x16xbf16>
    %c0_16 = arith.constant 0 : index
    %c0_17 = arith.constant 0 : index
    %22 = vector.load %arg4[%c0_16, %c0_17] : memref<128x16xbf16, #tpu.memory_space<vmem>>, vector<128x16xbf16>
    tpu.vector_store %arg4[%c0_16, %c0_17], %21 {strides = array<i32>} : memref<128x16xbf16, #tpu.memory_space<vmem>>, vector<128x16xbf16>,
    return
  }
  func.func @transform_0(%arg0: i32) -> (i32, i32, i32) {
    %c0_i32 = arith.constant 0 : i32
    %c0_i32_0 = arith.constant 0 : i32
    %c0_i32_1 = arith.constant 0 : i32
    return %c0_i32, %arg0, %c0_i32_0 : i32, i32, i32
  }
  func.func @transform_1(%arg0: i32) -> (i32, i32) {
    %c0_i32 = arith.constant 0 : i32
    %c0_i32_0 = arith.constant 0 : i32
    %c0_i32_1 = arith.constant 0 : i32
    return %c0_i32, %c0_i32_0 : i32, i32
  }
  func.func @transform_2(%arg0: i32) -> (i32, i32) {
    %c0_i32 = arith.constant 0 : i32
    %c0_i32_0 = arith.constant 0 : i32
    %c0_i32_1 = arith.constant 0 : i32
    return %c0_i32, %c0_i32_0 : i32, i32
  }
  func.func @transform_3(%arg0: i32) -> (i32, i32) {
    %c0_i32 = arith.constant 0 : i32
    %c0_i32_0 = arith.constant 0 : i32
    return %arg0, %c0_i32 : i32, i32
  }
}

module attributes {stable_mosaic.version = 11 : i64} {
  func.func @conv_relu_pool_kernel(%arg0: i32, %arg1: memref<4x32x144xbf16, #tpu.memory_space<vmem>>, %arg2: memref<144x32xbf16, #tpu.memory_space<vmem>>, %arg3: memref<1x32xf32, #tpu.memory_space<vmem>>, %arg4: memref<32x32xbf16, #tpu.memory_space<vmem>>) attributes {dimension_semantics = [#tpu.dimension_semantics<parallel>], iteration_bounds = array<i64: 1>, scalar_prefetch = 0 : i64, scratch_operands = 0 : i64, tpu.core_type = #tpu.core_type<tc>, window_params = [{transform_indices = @transform_0, window_bounds = array<i64: 4, 32, 144>}, {pipeline_mode = #tpu.pipeline_mode<synchronous>, transform_indices = @transform_1, window_bounds = array<i64: 144, 32>}, {pipeline_mode = #tpu.pipeline_mode<synchronous>, transform_indices = @transform_2, window_bounds = array<i64: 1, 32>}, {transform_indices = @transform_3, window_bounds = array<i64: 32, 32>}]} {
    %c0 = arith.constant 0 : index
    %c0_0 = arith.constant 0 : index
    %0 = vector.load %arg2[%c0, %c0_0] : memref<144x32xbf16, #tpu.memory_space<vmem>>, vector<144x32xbf16>
    %c0_1 = arith.constant 0 : index
    %c0_2 = arith.constant 0 : index
    %c0_3 = arith.constant 0 : index
    %1 = vector.load %arg1[%c0_1, %c0_2, %c0_3] : memref<4x32x144xbf16, #tpu.memory_space<vmem>>, vector<1x32x144xbf16>
    %2 = vector.shape_cast %1 : vector<1x32x144xbf16> to vector<32x144xbf16>
    %cst = arith.constant dense<0.000000e+00> : vector<32x32xf32>
    %3 = tpu.matmul %2, %0, %cst {dimension_numbers = #tpu.dot_dimension_numbers<[1], [0], [0], [1], [0, 0, 1, 1], [], []>} : vector<32x144xbf16>, vector<144x32xbf16>, vector<32x32xf32> -> vector<32x32xf32>
    %c1 = arith.constant 1 : index
    %c0_4 = arith.constant 0 : index
    %c0_5 = arith.constant 0 : index
    %4 = vector.load %arg1[%c1, %c0_4, %c0_5] : memref<4x32x144xbf16, #tpu.memory_space<vmem>>, vector<1x32x144xbf16>
    %5 = vector.shape_cast %4 : vector<1x32x144xbf16> to vector<32x144xbf16>
    %cst_6 = arith.constant dense<0.000000e+00> : vector<32x32xf32>
    %6 = tpu.matmul %5, %0, %cst_6 {dimension_numbers = #tpu.dot_dimension_numbers<[1], [0], [0], [1], [0, 0, 1, 1], [], []>} : vector<32x144xbf16>, vector<144x32xbf16>, vector<32x32xf32> -> vector<32x32xf32>
    %7 = arith.maximumf %3, %6 : vector<32x32xf32>
    %c2 = arith.constant 2 : index
    %c0_7 = arith.constant 0 : index
    %c0_8 = arith.constant 0 : index
    %8 = vector.load %arg1[%c2, %c0_7, %c0_8] : memref<4x32x144xbf16, #tpu.memory_space<vmem>>, vector<1x32x144xbf16>
    %9 = vector.shape_cast %8 : vector<1x32x144xbf16> to vector<32x144xbf16>
    %cst_9 = arith.constant dense<0.000000e+00> : vector<32x32xf32>
    %10 = tpu.matmul %9, %0, %cst_9 {dimension_numbers = #tpu.dot_dimension_numbers<[1], [0], [0], [1], [0, 0, 1, 1], [], []>} : vector<32x144xbf16>, vector<144x32xbf16>, vector<32x32xf32> -> vector<32x32xf32>
    %11 = arith.maximumf %7, %10 : vector<32x32xf32>
    %c3 = arith.constant 3 : index
    %c0_10 = arith.constant 0 : index
    %c0_11 = arith.constant 0 : index
    %12 = vector.load %arg1[%c3, %c0_10, %c0_11] : memref<4x32x144xbf16, #tpu.memory_space<vmem>>, vector<1x32x144xbf16>
    %13 = vector.shape_cast %12 : vector<1x32x144xbf16> to vector<32x144xbf16>
    %cst_12 = arith.constant dense<0.000000e+00> : vector<32x32xf32>
    %14 = tpu.matmul %13, %0, %cst_12 {dimension_numbers = #tpu.dot_dimension_numbers<[1], [0], [0], [1], [0, 0, 1, 1], [], []>} : vector<32x144xbf16>, vector<144x32xbf16>, vector<32x32xf32> -> vector<32x32xf32>
    %15 = arith.maximumf %11, %14 : vector<32x32xf32>
    %c0_13 = arith.constant 0 : index
    %c0_14 = arith.constant 0 : index
    %16 = vector.load %arg3[%c0_13, %c0_14] : memref<1x32xf32, #tpu.memory_space<vmem>>, vector<1x32xf32>
    %17 = vector.broadcast %16 : vector<1x32xf32> to vector<32x32xf32>
    %18 = arith.addf %15, %17 : vector<32x32xf32>
    %cst_15 = arith.constant 0.000000e+00 : f32
    %19 = vector.broadcast %cst_15 : f32 to vector<32x32xf32>
    %20 = arith.maximumf %18, %19 : vector<32x32xf32>
    %21 = arith.truncf %20 : vector<32x32xf32> to vector<32x32xbf16>
    %c0_16 = arith.constant 0 : index
    %c0_17 = arith.constant 0 : index
    %22 = vector.load %arg4[%c0_16, %c0_17] : memref<32x32xbf16, #tpu.memory_space<vmem>>, vector<32x32xbf16>
    tpu.vector_store %arg4[%c0_16, %c0_17], %21 {strides = array<i32>} : memref<32x32xbf16, #tpu.memory_space<vmem>>, vector<32x32xbf16>,
    return
  }
  func.func @transform_0(%arg0: i32) -> (i32, i32, i32) {
    %c0_i32 = arith.constant 0 : i32
    %c0_i32_0 = arith.constant 0 : i32
    %c0_i32_1 = arith.constant 0 : i32
    return %c0_i32, %arg0, %c0_i32_0 : i32, i32, i32
  }
  func.func @transform_1(%arg0: i32) -> (i32, i32) {
    %c0_i32 = arith.constant 0 : i32
    %c0_i32_0 = arith.constant 0 : i32
    %c0_i32_1 = arith.constant 0 : i32
    return %c0_i32, %c0_i32_0 : i32, i32
  }
  func.func @transform_2(%arg0: i32) -> (i32, i32) {
    %c0_i32 = arith.constant 0 : i32
    %c0_i32_0 = arith.constant 0 : i32
    %c0_i32_1 = arith.constant 0 : i32
    return %c0_i32, %c0_i32_0 : i32, i32
  }
  func.func @transform_3(%arg0: i32) -> (i32, i32) {
    %c0_i32 = arith.constant 0 : i32
    %c0_i32_0 = arith.constant 0 : i32
    return %arg0, %c0_i32 : i32, i32
  }
}

module attributes {stable_mosaic.version = 11 : i64} {
  func.func @mlp_kernel(%arg0: i32, %arg1: memref<2x512xbf16, #tpu.memory_space<vmem>>, %arg2: memref<512x512xbf16, #tpu.memory_space<vmem>>, %arg3: memref<1x512xf32, #tpu.memory_space<vmem>>, %arg4: memref<512x2xbf16, #tpu.memory_space<vmem>>, %arg5: memref<1x2xf32, #tpu.memory_space<vmem>>, %arg6: memref<2x2xf32, #tpu.memory_space<vmem>>) attributes {dimension_semantics = [#tpu.dimension_semantics<parallel>], iteration_bounds = array<i64: 1>, scalar_prefetch = 0 : i64, scratch_operands = 0 : i64, tpu.core_type = #tpu.core_type<tc>, window_params = [{transform_indices = @transform_0, window_bounds = array<i64: 2, 512>}, {pipeline_mode = #tpu.pipeline_mode<synchronous>, transform_indices = @transform_1, window_bounds = array<i64: 512, 512>}, {pipeline_mode = #tpu.pipeline_mode<synchronous>, transform_indices = @transform_2, window_bounds = array<i64: 1, 512>}, {pipeline_mode = #tpu.pipeline_mode<synchronous>, transform_indices = @transform_3, window_bounds = array<i64: 512, 2>}, {pipeline_mode = #tpu.pipeline_mode<synchronous>, transform_indices = @transform_4, window_bounds = array<i64: 1, 2>}, {transform_indices = @transform_5, window_bounds = array<i64: 2, 2>}]} {
    %c0 = arith.constant 0 : index
    %c0_0 = arith.constant 0 : index
    %0 = vector.load %arg1[%c0, %c0_0] : memref<2x512xbf16, #tpu.memory_space<vmem>>, vector<2x512xbf16>
    %c0_1 = arith.constant 0 : index
    %c0_2 = arith.constant 0 : index
    %1 = vector.load %arg2[%c0_1, %c0_2] : memref<512x512xbf16, #tpu.memory_space<vmem>>, vector<512x512xbf16>
    %cst = arith.constant dense<0.000000e+00> : vector<2x512xf32>
    %2 = tpu.matmul %0, %1, %cst {dimension_numbers = #tpu.dot_dimension_numbers<[1], [0], [0], [1], [0, 0, 1, 1], [], []>} : vector<2x512xbf16>, vector<512x512xbf16>, vector<2x512xf32> -> vector<2x512xf32>
    %c0_3 = arith.constant 0 : index
    %c0_4 = arith.constant 0 : index
    %3 = vector.load %arg3[%c0_3, %c0_4] : memref<1x512xf32, #tpu.memory_space<vmem>>, vector<1x512xf32>
    %4 = vector.broadcast %3 : vector<1x512xf32> to vector<2x512xf32>
    %5 = arith.addf %2, %4 : vector<2x512xf32>
    %cst_5 = arith.constant 0.000000e+00 : f32
    %6 = vector.broadcast %cst_5 : f32 to vector<2x512xf32>
    %7 = arith.maximumf %5, %6 : vector<2x512xf32>
    %8 = arith.truncf %7 : vector<2x512xf32> to vector<2x512xbf16>
    %c0_6 = arith.constant 0 : index
    %c0_7 = arith.constant 0 : index
    %9 = vector.load %arg4[%c0_6, %c0_7] : memref<512x2xbf16, #tpu.memory_space<vmem>>, vector<512x2xbf16>
    %cst_8 = arith.constant dense<0.000000e+00> : vector<2x2xf32>
    %10 = tpu.matmul %8, %9, %cst_8 {dimension_numbers = #tpu.dot_dimension_numbers<[1], [0], [0], [1], [0, 0, 1, 1], [], []>} : vector<2x512xbf16>, vector<512x2xbf16>, vector<2x2xf32> -> vector<2x2xf32>
    %c0_9 = arith.constant 0 : index
    %c0_10 = arith.constant 0 : index
    %11 = vector.load %arg5[%c0_9, %c0_10] : memref<1x2xf32, #tpu.memory_space<vmem>>, vector<1x2xf32>
    %12 = vector.broadcast %11 : vector<1x2xf32> to vector<2x2xf32>
    %13 = arith.addf %10, %12 : vector<2x2xf32>
    %c0_11 = arith.constant 0 : index
    %c0_12 = arith.constant 0 : index
    %14 = vector.load %arg6[%c0_11, %c0_12] : memref<2x2xf32, #tpu.memory_space<vmem>>, vector<2x2xf32>
    tpu.vector_store %arg6[%c0_11, %c0_12], %13 {strides = array<i32>} : memref<2x2xf32, #tpu.memory_space<vmem>>, vector<2x2xf32>,
    return
  }
  func.func @transform_0(%arg0: i32) -> (i32, i32) {
    %c0_i32 = arith.constant 0 : i32
    %c0_i32_0 = arith.constant 0 : i32
    return %arg0, %c0_i32 : i32, i32
  }
  func.func @transform_1(%arg0: i32) -> (i32, i32) {
    %c0_i32 = arith.constant 0 : i32
    %c0_i32_0 = arith.constant 0 : i32
    %c0_i32_1 = arith.constant 0 : i32
    return %c0_i32, %c0_i32_0 : i32, i32
  }
  func.func @transform_2(%arg0: i32) -> (i32, i32) {
    %c0_i32 = arith.constant 0 : i32
    %c0_i32_0 = arith.constant 0 : i32
    %c0_i32_1 = arith.constant 0 : i32
    return %c0_i32, %c0_i32_0 : i32, i32
  }
  func.func @transform_3(%arg0: i32) -> (i32, i32) {
    %c0_i32 = arith.constant 0 : i32
    %c0_i32_0 = arith.constant 0 : i32
    %c0_i32_1 = arith.constant 0 : i32
    return %c0_i32, %c0_i32_0 : i32, i32
  }
  func.func @transform_4(%arg0: i32) -> (i32, i32) {
    %c0_i32 = arith.constant 0 : i32
    %c0_i32_0 = arith.constant 0 : i32
    %c0_i32_1 = arith.constant 0 : i32
    return %c0_i32, %c0_i32_0 : i32, i32
  }
  func.func @transform_5(%arg0: i32) -> (i32, i32) {
    %c0_i32 = arith.constant 0 : i32
    %c0_i32_0 = arith.constant 0 : i32
    return %arg0, %c0_i32 : i32, i32
  }
}

</mosaic_0001>

<bundles_post_ra>
// kernel: simple_cnn_forward.3
= control target key start
LH: loop header
LB: loop body
LE: loop exit
PB: predicated region body
PF: predicated region fallthrough
CT: control target
= control target key end

     0   :  { %vm111_vm0 = vcmask 1044480   ;;  %vm112_vm1 = vcmask 1045504   ;;  %v930_v2 = vmov 65535   ;;  %vm86_vm2 = vcmask 220160   ;;  %s1173_s1 = inlined_call_operand.vmem [shape: bf16[27,16], index: 1, kind: input, shape index: {}]   ;;  %s1174_s0 = inlined_call_operand.vmem [shape: bf16[4,128,27], index: 0, kind: input, shape index: {}]   ;;  %s1175_s2 = inlined_call_operand.vmem [shape: f32[1,16], index: 2, kind: input, shape index: {}]   ;;  %s1176_s3 = inlined_call_operand.vmem [shape: bf16[128,16], index: 3, kind: output, shape index: {}]  }
   0x1   :  { %v716_v0 = vld [vmem:[%s1173_s1 + $0x8] sm:$0xf]  ;;  %v895_v1 = vld [vmem:[%s1173_s1 + $0x8] sm:$0x30]  ;;  %v113_v3 = vsel %vm111_vm0, 4294967295, %v930_v2  ;;  %v894_v7 = vld [vmem:[%s1173_s1] sm:$0xff] }
   0x2   :  { %v717_v4 = vor.u32 %v895_v1, %v716_v0  ;;  %v114_v5 = vsel %vm112_vm1, %v113_v3, 0  ;;  %v896_v8 = vld [vmem:[%s1174_s0] sm:$0xff]  ;;  %v897_v12 = vld [vmem:[%s1174_s0 + $0x8] sm:$0xff]  ;;  %v898_v16 = vld [vmem:[%s1174_s0 + $0x10] sm:$0xff]  ;;  %vm657_vm3 = vcmask 125952  }
   0x3   :  { %v904_v9 = vld [vmem:[%s1174_s0 + $0x40] sm:$0xff]  ;;  %v905_v13 = vld [vmem:[%s1174_s0 + $0x48] sm:$0xff]  ;;  %v906_v17 = vld [vmem:[%s1174_s0 + $0x50] sm:$0xff] }
   0x4   :  { %v116_v6 = vand.u32 %v717_v4, %v114_v5  ;;  %v912_v10 = vld [vmem:[%s1174_s0 + $0x80] sm:$0xff]  ;;  %v913_v14 = vld [vmem:[%s1174_s0 + $0x88] sm:$0xff]  ;;  %v914_v18 = vld [vmem:[%s1174_s0 + $0x90] sm:$0xff] }
   0x5   :  { %v920_v11 = vld [vmem:[%s1174_s0 + $0xc0] sm:$0xff]  ;;  %v921_v15 = vld [vmem:[%s1174_s0 + $0xc8] sm:$0xff]  ;;  %v922_v19 = vld [vmem:[%s1174_s0 + $0xd0] sm:$0xff] }
   0x6   :  { %124 = vmatpush.bf16.msra.mxu0 %v116_v6  ;;  %254 = vmatpush.bf16.msra.mxu1 %v116_v6  ;;  %v899_v20 = vld [vmem:[%s1174_s0 + $0x18] sm:$0xff]  ;;  %v900_v24 = vld [vmem:[%s1174_s0 + $0x20] sm:$0xff]  ;;  %v901_v28 = vld [vmem:[%s1174_s0 + $0x28] sm:$0xff] }
   0x7   :  { %400 = vmatpush.bf16.msra.mxu2 %v116_v6  ;;  %546 = vmatpush.bf16.msra.mxu3 %v116_v6  ;;  %v907_v21 = vld [vmem:[%s1174_s0 + $0x58] sm:$0xff]  ;;  %v908_v25 = vld [vmem:[%s1174_s0 + $0x60] sm:$0xff]  ;;  %v909_v29 = vld [vmem:[%s1174_s0 + $0x68] sm:$0xff] }
   0x8   :  { %v915_v22 = vld [vmem:[%s1174_s0 + $0x98] sm:$0xff]  ;;  %v916_v26 = vld [vmem:[%s1174_s0 + $0xa0] sm:$0xff]  ;;  %v917_v30 = vld [vmem:[%s1174_s0 + $0xa8] sm:$0xff] }
   0x9   :  { %v923_v23 = vld [vmem:[%s1174_s0 + $0xd8] sm:$0xff]  ;;  %v924_v27 = vld [vmem:[%s1174_s0 + $0xe0] sm:$0xff]  ;;  %v925_v31 = vld [vmem:[%s1174_s0 + $0xe8] sm:$0xff] }
   0xa   :  { %125 = vmatpush.bf16.msra.mxu0 %v894_v7  ;;  %255 = vmatpush.bf16.msra.mxu1 %v894_v7  ;;  %v902_v32 = vld [vmem:[%s1174_s0 + $0x30] sm:$0xff]  ;;  %v903_v36 = vld [vmem:[%s1174_s0 + $0x38] sm:$0xff]  ;;  %v1091_v46 = vld [vmem:[%s1175_s2] ss:$0 sm:$0xff] }
   0xb   :  { %401 = vmatpush.bf16.msra.mxu2 %v894_v7  ;;  %547 = vmatpush.bf16.msra.mxu3 %v894_v7  ;;  %v910_v33 = vld [vmem:[%s1174_s0 + $0x70] sm:$0xff]  ;;  %v911_v37 = vld [vmem:[%s1174_s0 + $0x78] sm:$0xff] }
   0xc   :  { %v918_v34 = vld [vmem:[%s1174_s0 + $0xb0] sm:$0xff]  ;;  %v919_v38 = vld [vmem:[%s1174_s0 + $0xb8] sm:$0xff] }
   0xd   :  { %718 = vmatmul.msk.bf16.vlgmr.msra.gmra.mxu0 %vm86_vm2, %v896_v8  ;;  %774 = vmatmul.msk.bf16.vlgmr.msra.gmra.mxu1 %vm86_vm2, %v904_v9  ;;  %v926_v35 = vld [vmem:[%s1174_s0 + $0xf0] sm:$0xff]  ;;  %v927_v39 = vld [vmem:[%s1174_s0 + $0xf8] sm:$0xff] }
   0xe   :  { %830 = vmatmul.msk.bf16.vlgmr.msra.gmra.mxu2 %vm86_vm2, %v912_v10  ;;  %886 = vmatmul.msk.bf16.vlgmr.msra.gmra.mxu3 %vm86_vm2, %v920_v11 }
  0x1d   :  { %719 = vmatmul.msk.bf16.gmra.mxu0 %vm86_vm2, %v897_v12  ;;  %775 = vmatmul.msk.bf16.gmra.mxu1 %vm86_vm2, %v905_v13 }
  0x1e   :  { %831 = vmatmul.msk.bf16.gmra.mxu2 %vm86_vm2, %v913_v14  ;;  %887 = vmatmul.msk.bf16.gmra.mxu3 %vm86_vm2, %v921_v15 }
  0x2d   :  { %720 = vmatmul.msk.bf16.gmra.mxu0 %vm86_vm2, %v898_v16  ;;  %776 = vmatmul.msk.bf16.gmra.mxu1 %vm86_vm2, %v906_v17 }
  0x2e   :  { %832 = vmatmul.msk.bf16.gmra.mxu2 %vm86_vm2, %v914_v18  ;;  %888 = vmatmul.msk.bf16.gmra.mxu3 %vm86_vm2, %v922_v19 }
  0x3d   :  { %721 = vmatmul.msk.bf16.gmra.mxu0 %vm86_vm2, %v899_v20  ;;  %777 = vmatmul.msk.bf16.gmra.mxu1 %vm86_vm2, %v907_v21 }
  0x3e   :  { %833 = vmatmul.msk.bf16.gmra.mxu2 %vm86_vm2, %v915_v22  ;;  %889 = vmatmul.msk.bf16.gmra.mxu3 %vm86_vm2, %v923_v23 }
  0x4d   :  { %722 = vmatmul.msk.bf16.gmra.mxu0 %vm86_vm2, %v900_v24  ;;  %778 = vmatmul.msk.bf16.gmra.mxu1 %vm86_vm2, %v908_v25 }
  0x4e   :  { %834 = vmatmul.msk.bf16.gmra.mxu2 %vm86_vm2, %v916_v26  ;;  %890 = vmatmul.msk.bf16.gmra.mxu3 %vm86_vm2, %v924_v27 }
  0x5d   :  { %723 = vmatmul.msk.bf16.gmra.mxu0 %vm86_vm2, %v901_v28  ;;  %779 = vmatmul.msk.bf16.gmra.mxu1 %vm86_vm2, %v909_v29 }
  0x5e   :  { %835 = vmatmul.msk.bf16.gmra.mxu2 %vm86_vm2, %v917_v30  ;;  %891 = vmatmul.msk.bf16.gmra.mxu3 %vm86_vm2, %v925_v31 }
  0x6d   :  { %724 = vmatmul.msk.bf16.gmra.mxu0 %vm86_vm2, %v902_v32  ;;  %780 = vmatmul.msk.bf16.gmra.mxu1 %vm86_vm2, %v910_v33 }
  0x6e   :  { %836 = vmatmul.msk.bf16.gmra.mxu2 %vm86_vm2, %v918_v34  ;;  %892 = vmatmul.msk.bf16.gmra.mxu3 %vm86_vm2, %v926_v35 }
  0x7d   :  { %725 = vmatmul.msk.bf16.gmra.mxu0 %vm86_vm2, %v903_v36  ;;  %781 = vmatmul.msk.bf16.gmra.mxu1 %vm86_vm2, %v911_v37 }
  0x7e   :  { %837 = vmatmul.msk.bf16.gmra.mxu2 %vm86_vm2, %v919_v38  ;;  %893 = vmatmul.msk.bf16.gmra.mxu3 %vm86_vm2, %v927_v39 }
  0x8a   :  { %v127_v40 = vpop.f32.mrf.mxu0  ;;  %v257_v41 = vpop.f32.mrf.mxu1 }
  0x8b   :  { %v297_v42 = vmax.f32 %v127_v40, %v257_v41 }
  0x91   :  { %v403_v43 = vpop.f32.mrf.mxu2  ;;  %v549_v44 = vpop.f32.mrf.mxu3 }
  0x92   :  { %v443_v45 = vmax.f32 %v297_v42, %v403_v43  ;;  %v129_v47 = vpop.f32.mrf.mxu0  ;;  %v259_v48 = vpop.f32.mrf.mxu1 }
  0x93   :  { %v298_v52 = vmax.f32 %v129_v47, %v259_v48 }
  0x94   :  { %v589_v49 = vmax.f32 %v443_v45, %v549_v44 }
  0x96   :  { %v609_v50 = vadd.f32 %v1091_v46, %v589_v49 }
  0x98   :  { %v625_v51 = vmax.f32 %v609_v50, 0.0 }
  0x99   :  { %v405_v53 = vpop.f32.mrf.mxu2  ;;  %v551_v54 = vpop.f32.mrf.mxu3 }
  0x9a   :  { %v641_v55 = vpack.c.bf16 %v625_v51, %v625_v51  ;;  %v444_v56 = vmax.f32 %v298_v52, %v405_v53  ;;  %v132_v57 = vpop.f32.mrf.mxu0  ;;  %v262_v58 = vpop.f32.mrf.mxu1 }
  0x9b   :  { %v299_v61 = vmax.f32 %v132_v57, %v262_v58 }
  0x9c   :  { %658 = vst.msk [vmem:[%s1176_s3] sm:$0xf] %vm657_vm3, %v641_v55  ;;  %v590_v59 = vmax.f32 %v444_v56, %v551_v54 }
  0x9e   :  { %v610_v60 = vadd.f32 %v1091_v46, %v590_v59 }
  0xa0   :  { %v626_v62 = vmax.f32 %v610_v60, 0.0 }
  0xa1   :  { %v408_v63 = vpop.f32.mrf.mxu2  ;;  %v554_v0 = vpop.f32.mrf.mxu3 }
  0xa2   :  { %v642_v1 = vpack.c.bf16 %v626_v62, %v626_v62  ;;  %v445_v2 = vmax.f32 %v299_v61, %v408_v63  ;;  %v134_v3 = vpop.f32.mrf.mxu0  ;;  %v264_v4 = vpop.f32.mrf.mxu1 }
  0xa3   :  { %v300_v8 = vmax.f32 %v134_v3, %v264_v4 }
  0xa4   :  { %659 = vst.msk [vmem:[%s1176_s3 + $0x4] sm:$0xf] %vm657_vm3, %v642_v1  ;;  %v591_v5 = vmax.f32 %v445_v2, %v554_v0 }
  0xa6   :  { %v611_v6 = vadd.f32 %v1091_v46, %v591_v5 }
  0xa8   :  { %v627_v7 = vmax.f32 %v611_v6, 0.0 }
  0xa9   :  { %v410_v9 = vpop.f32.mrf.mxu2  ;;  %v556_v10 = vpop.f32.mrf.mxu3 }
  0xaa   :  { %v643_v11 = vpack.c.bf16 %v627_v7, %v627_v7  ;;  %v446_v12 = vmax.f32 %v300_v8, %v410_v9  ;;  %v137_v13 = vpop.f32.mrf.mxu0  ;;  %v267_v14 = vpop.f32.mrf.mxu1 }
  0xab   :  { %v301_v17 = vmax.f32 %v137_v13, %v267_v14 }
  0xac   :  { %660 = vst.msk [vmem:[%s1176_s3 + $0x8] sm:$0xf] %vm657_vm3, %v643_v11  ;;  %v592_v15 = vmax.f32 %v446_v12, %v556_v10 }
  0xae   :  { %v612_v16 = vadd.f32 %v1091_v46, %v592_v15 }
  0xb0   :  { %v628_v18 = vmax.f32 %v612_v16, 0.0 }
  0xb1   :  { %v413_v19 = vpop.f32.mrf.mxu2  ;;  %v559_v20 = vpop.f32.mrf.mxu3 }
  0xb2   :  { %v644_v21 = vpack.c.bf16 %v628_v18, %v628_v18  ;;  %v447_v22 = vmax.f32 %v301_v17, %v413_v19  ;;  %v139_v23 = vpop.f32.mrf.mxu0  ;;  %v269_v24 = vpop.f32.mrf.mxu1 }
  0xb3   :  { %v302_v28 = vmax.f32 %v139_v23, %v269_v24 }
  0xb4   :  { %661 = vst.msk [vmem:[%s1176_s3 + $0xc] sm:$0xf] %vm657_vm3, %v644_v21  ;;  %v593_v25 = vmax.f32 %v447_v22, %v559_v20 }
  0xb6   :  { %v613_v26 = vadd.f32 %v1091_v46, %v593_v25 }
  0xb8   :  { %v629_v27 = vmax.f32 %v613_v26, 0.0 }
  0xb9   :  { %v415_v29 = vpop.f32.mrf.mxu2  ;;  %v561_v30 = vpop.f32.mrf.mxu3 }
  0xba   :  { %v645_v31 = vpack.c.bf16 %v629_v27, %v629_v27  ;;  %v448_v32 = vmax.f32 %v302_v28, %v415_v29  ;;  %v142_v33 = vpop.f32.mrf.mxu0  ;;  %v272_v34 = vpop.f32.mrf.mxu1 }
  0xbb   :  { %v303_v37 = vmax.f32 %v142_v33, %v272_v34 }
  0xbc   :  { %662 = vst.msk [vmem:[%s1176_s3 + $0x10] sm:$0xf] %vm657_vm3, %v645_v31  ;;  %v594_v35 = vmax.f32 %v448_v32, %v561_v30 }
  0xbe   :  { %v614_v36 = vadd.f32 %v1091_v46, %v594_v35 }
  0xc0   :  { %v630_v38 = vmax.f32 %v614_v36, 0.0 }
  0xc1   :  { %v418_v39 = vpop.f32.mrf.mxu2  ;;  %v564_v40 = vpop.f32.mrf.mxu3 }
  0xc2   :  { %v646_v41 = vpack.c.bf16 %v630_v38, %v630_v38  ;;  %v449_v42 = vmax.f32 %v303_v37, %v418_v39  ;;  %v144_v43 = vpop.f32.mrf.mxu0  ;;  %v274_v44 = vpop.f32.mrf.mxu1 }
  0xc3   :  { %v304_v49 = vmax.f32 %v144_v43, %v274_v44 }
  0xc4   :  { %663 = vst.msk [vmem:[%s1176_s3 + $0x14] sm:$0xf] %vm657_vm3, %v646_v41  ;;  %v595_v45 = vmax.f32 %v449_v42, %v564_v40 }
  0xc6   :  { %v615_v47 = vadd.f32 %v1091_v46, %v595_v45 }
  0xc8   :  { %v631_v48 = vmax.f32 %v615_v47, 0.0 }
  0xc9   :  { %v420_v50 = vpop.f32.mrf.mxu2  ;;  %v566_v51 = vpop.f32.mrf.mxu3 }
  0xca   :  { %v647_v52 = vpack.c.bf16 %v631_v48, %v631_v48  ;;  %v450_v53 = vmax.f32 %v304_v49, %v420_v50  ;;  %v147_v54 = vpop.f32.mrf.mxu0  ;;  %v277_v55 = vpop.f32.mrf.mxu1 }
  0xcb   :  { %v305_v58 = vmax.f32 %v147_v54, %v277_v55 }
  0xcc   :  { %664 = vst.msk [vmem:[%s1176_s3 + $0x18] sm:$0xf] %vm657_vm3, %v647_v52  ;;  %v596_v56 = vmax.f32 %v450_v53, %v566_v51 }
  0xce   :  { %v616_v57 = vadd.f32 %v1091_v46, %v596_v56 }
  0xd0   :  { %v632_v59 = vmax.f32 %v616_v57, 0.0 }
  0xd1   :  { %v423_v60 = vpop.f32.mrf.mxu2  ;;  %v569_v61 = vpop.f32.mrf.mxu3 }
  0xd2   :  { %v648_v62 = vpack.c.bf16 %v632_v59, %v632_v59  ;;  %v451_v63 = vmax.f32 %v305_v58, %v423_v60  ;;  %v149_v0 = vpop.f32.mrf.mxu0  ;;  %v279_v1 = vpop.f32.mrf.mxu1 }
  0xd3   :  { %v306_v5 = vmax.f32 %v149_v0, %v279_v1 }
  0xd4   :  { %665 = vst.msk [vmem:[%s1176_s3 + $0x1c] sm:$0xf] %vm657_vm3, %v648_v62  ;;  %v597_v2 = vmax.f32 %v451_v63, %v569_v61 }
  0xd6   :  { %v617_v3 = vadd.f32 %v1091_v46, %v597_v2 }
  0xd8   :  { %v633_v4 = vmax.f32 %v617_v3, 0.0 }
  0xd9   :  { %v425_v6 = vpop.f32.mrf.mxu2  ;;  %v571_v7 = vpop.f32.mrf.mxu3 }
  0xda   :  { %v649_v8 = vpack.c.bf16 %v633_v4, %v633_v4  ;;  %v452_v9 = vmax.f32 %v306_v5, %v425_v6  ;;  %v152_v10 = vpop.f32.mrf.mxu0  ;;  %v282_v11 = vpop.f32.mrf.mxu1 }
  0xdb   :  { %v307_v14 = vmax.f32 %v152_v10, %v282_v11 }
  0xdc   :  { %666 = vst.msk [vmem:[%s1176_s3 + $0x20] sm:$0xf] %vm657_vm3, %v649_v8  ;;  %v598_v12 = vmax.f32 %v452_v9, %v571_v7 }
  0xde   :  { %v618_v13 = vadd.f32 %v1091_v46, %v598_v12 }
  0xe0   :  { %v634_v15 = vmax.f32 %v618_v13, 0.0 }
  0xe1   :  { %v428_v16 = vpop.f32.mrf.mxu2  ;;  %v574_v17 = vpop.f32.mrf.mxu3 }
  0xe2   :  { %v650_v18 = vpack.c.bf16 %v634_v15, %v634_v15  ;;  %v453_v19 = vmax.f32 %v307_v14, %v428_v16  ;;  %v154_v20 = vpop.f32.mrf.mxu0  ;;  %v284_v21 = vpop.f32.mrf.mxu1 }
  0xe3   :  { %v308_v25 = vmax.f32 %v154_v20, %v284_v21 }
  0xe4   :  { %667 = vst.msk [vmem:[%s1176_s3 + $0x24] sm:$0xf] %vm657_vm3, %v650_v18  ;;  %v599_v22 = vmax.f32 %v453_v19, %v574_v17 }
  0xe6   :  { %v619_v23 = vadd.f32 %v1091_v46, %v599_v22 }
  0xe8   :  { %v635_v24 = vmax.f32 %v619_v23, 0.0 }
  0xe9   :  { %v430_v26 = vpop.f32.mrf.mxu2  ;;  %v576_v27 = vpop.f32.mrf.mxu3 }
  0xea   :  { %v651_v28 = vpack.c.bf16 %v635_v24, %v635_v24  ;;  %v454_v29 = vmax.f32 %v308_v25, %v430_v26  ;;  %v157_v30 = vpop.f32.mrf.mxu0  ;;  %v287_v31 = vpop.f32.mrf.mxu1 }
  0xeb   :  { %v309_v34 = vmax.f32 %v157_v30, %v287_v31 }
  0xec   :  { %668 = vst.msk [vmem:[%s1176_s3 + $0x28] sm:$0xf] %vm657_vm3, %v651_v28  ;;  %v600_v32 = vmax.f32 %v454_v29, %v576_v27 }
  0xee   :  { %v620_v33 = vadd.f32 %v1091_v46, %v600_v32 }
  0xf0   :  { %v636_v35 = vmax.f32 %v620_v33, 0.0 }
  0xf1   :  { %v433_v36 = vpop.f32.mrf.mxu2  ;;  %v579_v37 = vpop.f32.mrf.mxu3 }
  0xf2   :  { %v652_v38 = vpack.c.bf16 %v636_v35, %v636_v35  ;;  %v455_v39 = vmax.f32 %v309_v34, %v433_v36  ;;  %v159_v40 = vpop.f32.mrf.mxu0  ;;  %v289_v41 = vpop.f32.mrf.mxu1 }
  0xf3   :  { %v310_v45 = vmax.f32 %v159_v40, %v289_v41 }
  0xf4   :  { %669 = vst.msk [vmem:[%s1176_s3 + $0x2c] sm:$0xf] %vm657_vm3, %v652_v38  ;;  %v601_v42 = vmax.f32 %v455_v39, %v579_v37 }
  0xf6   :  { %v621_v43 = vadd.f32 %v1091_v46, %v601_v42 }
  0xf8   :  { %v637_v44 = vmax.f32 %v621_v43, 0.0 }
  0xf9   :  { %v435_v47 = vpop.f32.mrf.mxu2  ;;  %v581_v48 = vpop.f32.mrf.mxu3 }
  0xfa   :  { %v653_v49 = vpack.c.bf16 %v637_v44, %v637_v44  ;;  %v456_v50 = vmax.f32 %v310_v45, %v435_v47  ;;  %v162_v51 = vpop.f32.mrf.mxu0  ;;  %v292_v52 = vpop.f32.mrf.mxu1 }
  0xfb   :  { %v311_v55 = vmax.f32 %v162_v51, %v292_v52 }
  0xfc   :  { %670 = vst.msk [vmem:[%s1176_s3 + $0x30] sm:$0xf] %vm657_vm3, %v653_v49  ;;  %v602_v53 = vmax.f32 %v456_v50, %v581_v48 }
  0xfe   :  { %v622_v54 = vadd.f32 %v1091_v46, %v602_v53 }
 0x100   :  { %v638_v56 = vmax.f32 %v622_v54, 0.0 }
 0x101   :  { %v438_v57 = vpop.f32.mrf.mxu2  ;;  %v584_v58 = vpop.f32.mrf.mxu3 }
 0x102   :  { %v654_v59 = vpack.c.bf16 %v638_v56, %v638_v56  ;;  %v457_v60 = vmax.f32 %v311_v55, %v438_v57  ;;  %v164_v62 = vpop.f32.mrf.mxu0  ;;  %v294_v63 = vpop.f32.mrf.mxu1 }
 0x103   :  { %v312_v2 = vmax.f32 %v164_v62, %v294_v63 }
 0x104   :  { %671 = vst.msk [vmem:[%s1176_s3 + $0x34] sm:$0xf] %vm657_vm3, %v654_v59  ;;  %v603_v61 = vmax.f32 %v457_v60, %v584_v58 }
 0x106   :  { %v623_v0 = vadd.f32 %v1091_v46, %v603_v61 }
 0x108   :  { %v639_v1 = vmax.f32 %v623_v0, 0.0 }
 0x109   :  { %v440_v3 = vpop.f32.mrf.mxu2  ;;  %v586_v6 = vpop.f32.mrf.mxu3 }
 0x10a   :  { %v655_v4 = vpack.c.bf16 %v639_v1, %v639_v1  ;;  %v458_v5 = vmax.f32 %v312_v2, %v440_v3 }
 0x10c   :  { %672 = vst.msk [vmem:[%s1176_s3 + $0x38] sm:$0xf] %vm657_vm3, %v655_v4  ;;  %v604_v7 = vmax.f32 %v458_v5, %v586_v6 }
 0x10e   :  { %v624_v8 = vadd.f32 %v1091_v46, %v604_v7 }
 0x110   :  { %v640_v9 = vmax.f32 %v624_v8, 0.0 }
 0x112   :  { %v656_v10 = vpack.c.bf16 %v640_v9, %v640_v9 }
 0x114   :  { %673 = vst.msk [vmem:[%s1176_s3 + $0x3c] sm:$0xf] %vm657_vm3, %v656_v10 }

// kernel: simple_cnn_forward.4
= control target key start
LH: loop header
LB: loop body
LE: loop exit
PB: predicated region body
PF: predicated region fallthrough
CT: control target
= control target key end

     0   :  { %vm109_vm0 = vcmask 130048   ;;  %vm383_vm1 = vcmask 257024   ;;  %s745_s1 = inlined_call_operand.vmem [shape: bf16[144,32], index: 1, kind: input, shape index: {}]   ;;  %s746_s0 = inlined_call_operand.vmem [shape: bf16[4,32,144], index: 0, kind: input, shape index: {}]   ;;  %s747_s2 = inlined_call_operand.vmem [shape: f32[1,32], index: 2, kind: input, shape index: {}]   ;;  %s748_s3 = inlined_call_operand.vmem [shape: bf16[32,32], index: 3, kind: output, shape index: {}]  }
   0x1   :  { %v570_v0 = vld [vmem:[%s745_s1 + $0x38] sm:$0xff]  ;;  %v575_v1 = vld [vmem:[%s745_s1 + $0x40] sm:$0xff]  ;;  %v396_v3 = vld [vmem:[%s746_s0 + $0x8] sm:$0xf0] }
   0x2   :  { %v521_v2 = vld [vmem:[%s746_s0 + $0x4] sm:$0xf]  ;;  %v454_v5 = vld [vmem:[%s746_s0 + $0x28] sm:$0xf0]  ;;  %116 = vmatpush.bf16.msra.mxu0 %v570_v0  ;;  %142 = vmatpush.bf16.msra.mxu1 %v575_v1  ;;  %v594_v8 = vld [vmem:[%s745_s1 + $0x30] sm:$0xff] }
   0x3   :  { %v525_v4 = vld [vmem:[%s746_s0 + $0x24] sm:$0xf]  ;;  %v399_v6 = vor.u32 %v521_v2, %v396_v3  ;;  %183 = vmatpush.bf16.msra.mxu2 %v570_v0  ;;  %209 = vmatpush.bf16.msra.mxu3 %v575_v1  ;;  %v517_v9 = vld [vmem:[%s745_s1 + $0x28] sm:$0xff]  ;;  %v615_v11 = vld [vmem:[%s745_s1 + $0x18] sm:$0xff] }
   0x4   :  { %v457_v7 = vor.u32 %v525_v4, %v454_v5  ;;  %v516_v10 = vld [vmem:[%s745_s1 + $0x20] sm:$0xff]  ;;  %v523_v12 = vld [vmem:[%s746_s0 + $0x14] sm:$0xf]  ;;  %v404_v13 = vld [vmem:[%s746_s0 + $0x18] sm:$0xf0] }
   0x5   :  { %444 = vmatmul.msk.bf16.vlgmr.msra.gmra.mxu1 %vm109_vm0, %v399_v6  ;;  %v527_v14 = vld [vmem:[%s746_s0 + $0x34] sm:$0xf]  ;;  %v462_v15 = vld [vmem:[%s746_s0 + $0x38] sm:$0xf0]  ;;  %v407_v16 = vor.u32 %v523_v12, %v404_v13  ;;  %v513_v19 = vld [vmem:[%s745_s1 + $0x8] sm:$0xff] }
   0x6   :  { %254 = vmatpush.bf16.msrb.mxu1 %v570_v0  ;;  %466 = vmatmul.msk.bf16.vlgmr.msra.gmra.mxu3 %vm109_vm0, %v457_v7  ;;  %v465_v17 = vor.u32 %v527_v14, %v462_v15  ;;  %v514_v18 = vld [vmem:[%s745_s1 + $0x10] sm:$0xff]  ;;  %v512_v20 = vld [vmem:[%s745_s1] sm:$0xff]  ;;  %v522_v22 = vld [vmem:[%s746_s0 + $0x4] sm:$0xf0] }
   0x7   :  { %280 = vmatpush.bf16.msrb.mxu3 %v575_v1  ;;  %117 = vmatpush.bf16.msra.mxu0 %v594_v8  ;;  %v394_v21 = vld [vmem:[%s746_s0] sm:$0xf]  ;;  %v526_v24 = vld [vmem:[%s746_s0 + $0x24] sm:$0xf0]  ;;  %v529_v29 = vld [vmem:[%s746_s0 + $0x44] sm:$0xf] }
   0x8   :  { %184 = vmatpush.bf16.msra.mxu2 %v594_v8  ;;  %v452_v23 = vld [vmem:[%s746_s0 + $0x20] sm:$0xf]  ;;  %v395_v25 = vor.u32 %v522_v22, %v394_v21  ;;  %v530_v28 = vld [vmem:[%s746_s0 + $0x44] sm:$0xf0]  ;;  %v476_v30 = vld [vmem:[%s746_s0 + $0x48] sm:$0xf0] }
   0x9   :  { %v453_v26 = vor.u32 %v526_v24, %v452_v23  ;;  %v474_v27 = vld [vmem:[%s746_s0 + $0x40] sm:$0xf]  ;;  %v479_v32 = vor.u32 %v529_v29, %v476_v30  ;;  %v402_v33 = vld [vmem:[%s746_s0 + $0x10] sm:$0xf]  ;;  %v524_v34 = vld [vmem:[%s746_s0 + $0x14] sm:$0xf0] }
   0xa   :  { %255 = vmatpush.bf16.msrb.mxu1 %v594_v8  ;;  %v475_v31 = vor.u32 %v530_v28, %v474_v27  ;;  %v460_v35 = vld [vmem:[%s746_s0 + $0x30] sm:$0xf]  ;;  %v528_v36 = vld [vmem:[%s746_s0 + $0x34] sm:$0xf0]  ;;  %v403_v37 = vor.u32 %v524_v34, %v402_v33  ;;  %v531_v41 = vld [vmem:[%s746_s0 + $0x54] sm:$0xf] }
   0xb   :  { %545 = vmatpush.bf16.msra.mxu3 %v575_v1  ;;  %118 = vmatpush.bf16.msra.mxu0 %v517_v9  ;;  %v461_v38 = vor.u32 %v528_v36, %v460_v35  ;;  %v482_v39 = vld [vmem:[%s746_s0 + $0x50] sm:$0xf]  ;;  %v532_v40 = vld [vmem:[%s746_s0 + $0x54] sm:$0xf0]  ;;  %v484_v42 = vld [vmem:[%s746_s0 + $0x58] sm:$0xf0] }
   0xc   :  { %185 = vmatpush.bf16.msra.mxu2 %v517_v9  ;;  %v483_v43 = vor.u32 %v532_v40, %v482_v39  ;;  %v487_v44 = vor.u32 %v531_v41, %v484_v42  ;;  %v496_v45 = vld [vmem:[%s746_s0 + $0x60] sm:$0xf]  ;;  %v534_v46 = vld [vmem:[%s746_s0 + $0x64] sm:$0xf0]  ;;  %v533_v47 = vld [vmem:[%s746_s0 + $0x64] sm:$0xf] }
   0xd   :  { %v498_v48 = vld [vmem:[%s746_s0 + $0x68] sm:$0xf0]  ;;  %v497_v49 = vor.u32 %v534_v46, %v496_v45  ;;  %v504_v51 = vld [vmem:[%s746_s0 + $0x70] sm:$0xf]  ;;  %v536_v52 = vld [vmem:[%s746_s0 + $0x74] sm:$0xf0] }
   0xe   :  { %256 = vmatpush.bf16.msrb.mxu1 %v517_v9  ;;  %v501_v50 = vor.u32 %v533_v47, %v498_v48  ;;  %v535_v53 = vld [vmem:[%s746_s0 + $0x74] sm:$0xf]  ;;  %v506_v54 = vld [vmem:[%s746_s0 + $0x78] sm:$0xf0]  ;;  %v505_v55 = vor.u32 %v536_v52, %v504_v51  ;;  %v546_v28 = vld [vmem:[%s747_s2] ss:$0 sm:$0xff] }
   0xf   :  { %119 = vmatpush.bf16.msra.mxu0 %v516_v10  ;;  %v509_v56 = vor.u32 %v535_v53, %v506_v54 }
  0x10   :  { %186 = vmatpush.bf16.msra.mxu2 %v516_v10 }
  0x12   :  { %257 = vmatpush.bf16.msrb.mxu1 %v516_v10 }
  0x13   :  { %120 = vmatpush.bf16.msra.mxu0 %v615_v11 }
  0x14   :  { %187 = vmatpush.bf16.msra.mxu2 %v615_v11 }
  0x15   :  { %445 = vmatmul.msk.bf16.gmra.mxu1 %vm109_vm0, %v407_v16 }
  0x16   :  { %258 = vmatpush.bf16.msrb.mxu1 %v615_v11  ;;  %467 = vmatmul.msk.bf16.gmra.mxu3 %vm109_vm0, %v465_v17 }
  0x17   :  { %121 = vmatpush.bf16.msra.mxu0 %v514_v18 }
  0x18   :  { %188 = vmatpush.bf16.msra.mxu2 %v514_v18 }
  0x1a   :  { %259 = vmatpush.bf16.msrb.mxu1 %v514_v18 }
  0x1b   :  { %122 = vmatpush.bf16.msra.mxu0 %v513_v19 }
  0x1c   :  { %189 = vmatpush.bf16.msra.mxu2 %v513_v19 }
  0x1e   :  { %260 = vmatpush.bf16.msrb.mxu1 %v513_v19 }
  0x1f   :  { %123 = vmatpush.bf16.msra.mxu0 %v512_v20 }
  0x20   :  { %190 = vmatpush.bf16.msra.mxu2 %v512_v20 }
  0x22   :  { %261 = vmatpush.bf16.msrb.mxu1 %v512_v20  ;;  %124 = vmatmul.bf16.vlgmr.msra.gmra.mxu0 %v395_v25 }
  0x23   :  { %325 = vmatpush.bf16.msrb.mxu0 %v570_v0  ;;  %191 = vmatmul.bf16.vlgmr.msra.gmra.mxu2 %v453_v26 }
  0x24   :  { %351 = vmatpush.bf16.msrb.mxu2 %v575_v1 }
  0x25   :  { %262 = vmatmul.bf16.vlgmr.msrb.gmra.mxu1 %v475_v31 }
  0x26   :  { %537 = vmatpush.bf16.msra.mxu1 %v570_v0  ;;  %488 = vmatmul.msk.bf16.vlgmr.msrb.gmra.mxu3 %vm109_vm0, %v479_v32 }
  0x27   :  { %326 = vmatpush.bf16.msrb.mxu0 %v594_v8 }
  0x2a   :  { %538 = vmatpush.bf16.msra.mxu1 %v594_v8 }
  0x2b   :  { %327 = vmatpush.bf16.msrb.mxu0 %v517_v9 }
  0x2e   :  { %539 = vmatpush.bf16.msra.mxu1 %v517_v9 }
  0x2f   :  { %328 = vmatpush.bf16.msrb.mxu0 %v516_v10 }
  0x32   :  { %540 = vmatpush.bf16.msra.mxu1 %v516_v10  ;;  %129 = vmatmul.bf16.gmra.mxu0 %v403_v37 }
  0x33   :  { %329 = vmatpush.bf16.msrb.mxu0 %v615_v11  ;;  %196 = vmatmul.bf16.gmra.mxu2 %v461_v38 }
  0x35   :  { %267 = vmatmul.bf16.gmra.mxu1 %v483_v43 }
  0x36   :  { %541 = vmatpush.bf16.msra.mxu1 %v615_v11  ;;  %489 = vmatmul.msk.bf16.gmra.mxu3 %vm109_vm0, %v487_v44 }
  0x37   :  { %330 = vmatpush.bf16.msrb.mxu0 %v514_v18 }
  0x3a   :  { %542 = vmatpush.bf16.msra.mxu1 %v514_v18 }
  0x3b   :  { %331 = vmatpush.bf16.msrb.mxu0 %v513_v19 }
  0x3e   :  { %543 = vmatpush.bf16.msra.mxu1 %v513_v19 }
  0x3f   :  { %332 = vmatpush.bf16.msrb.mxu0 %v512_v20 }
  0x42   :  { %544 = vmatpush.bf16.msra.mxu1 %v512_v20  ;;  %333 = vmatmul.bf16.vlgmr.msrb.gmra.mxu0 %v497_v49 }
  0x43   :  { %510 = vmatmul.msk.bf16.vlgmr.msrb.gmra.mxu2 %vm109_vm0, %v501_v50 }
  0x45   :  { %338 = vmatmul.bf16.vlgmr.msra.gmra.mxu1 %v505_v55 }
  0x46   :  { %511 = vmatmul.msk.bf16.vlgmr.msra.gmra.mxu3 %vm109_vm0, %v509_v56 }
  0x82   :  { %v144_v57 = vpop.f32.mrf.mxu1 }
  0x89   :  { %v211_v58 = vpop.f32.mrf.mxu3 }
  0x8a   :  { %v146_v59 = vpop.f32.mrf.mxu1 }
  0x91   :  { %v213_v60 = vpop.f32.mrf.mxu3 }
  0x92   :  { %v149_v61 = vpop.f32.mrf.mxu1 }
  0x99   :  { %v216_v62 = vpop.f32.mrf.mxu3 }
  0x9a   :  { %v151_v63 = vpop.f32.mrf.mxu1 }
  0x9f   :  { %v125_v0 = vpop.f32.mrf.mxu0 }
  0xa0   :  { %v145_v18 = vadd.f32 %v144_v57, %v125_v0 }
  0xa1   :  { %v218_v1 = vpop.f32.mrf.mxu3 }
  0xa2   :  { %v263_v2 = vpop.f32.mrf.mxu1 }
  0xa6   :  { %v192_v3 = vpop.f32.mrf.mxu2 }
  0xa7   :  { %v127_v4 = vpop.f32.mrf.mxu0  ;;  %v212_v16 = vadd.f32 %v211_v58, %v192_v3 }
  0xa8   :  { %v147_v33 = vadd.f32 %v146_v59, %v127_v4 }
  0xa9   :  { %v282_v5 = vpop.f32.mrf.mxu3  ;;  %v221_v21 = vmax.f32 %v145_v18, %v212_v16 }
  0xaa   :  { %v265_v6 = vpop.f32.mrf.mxu1  ;;  %v283_v19 = vadd.f32 %v282_v5, %v263_v2 }
  0xac   :  { %v292_v24 = vmax.f32 %v221_v21, %v283_v19 }
  0xae   :  { %v194_v7 = vpop.f32.mrf.mxu2 }
  0xaf   :  { %v130_v8 = vpop.f32.mrf.mxu0  ;;  %v214_v29 = vadd.f32 %v213_v60, %v194_v7 }
  0xb0   :  { %v150_v25 = vadd.f32 %v149_v61, %v130_v8 }
  0xb1   :  { %v284_v9 = vpop.f32.mrf.mxu3  ;;  %v222_v39 = vmax.f32 %v147_v33, %v214_v29 }
  0xb2   :  { %v268_v10 = vpop.f32.mrf.mxu1  ;;  %v285_v34 = vadd.f32 %v284_v9, %v265_v6 }
  0xb4   :  { %v293_v43 = vmax.f32 %v222_v39, %v285_v34 }
  0xb6   :  { %v197_v11 = vpop.f32.mrf.mxu2 }
  0xb7   :  { %v132_v13 = vpop.f32.mrf.mxu0  ;;  %v217_v22 = vadd.f32 %v216_v62, %v197_v11 }
  0xb8   :  { %v152_v44 = vadd.f32 %v151_v63, %v132_v13 }
  0xb9   :  { %v287_v12 = vpop.f32.mrf.mxu3  ;;  %v223_v31 = vmax.f32 %v150_v25, %v217_v22 }
  0xba   :  { %v270_v14 = vpop.f32.mrf.mxu1  ;;  %v288_v26 = vadd.f32 %v287_v12, %v268_v10 }
  0xbc   :  { %v294_v36 = vmax.f32 %v223_v31, %v288_v26 }
  0xbe   :  { %v199_v15 = vpop.f32.mrf.mxu2 }
  0xbf   :  { %v334_v20 = vpop.f32.mrf.mxu0  ;;  %v219_v40 = vadd.f32 %v218_v1, %v199_v15 }
  0xc1   :  { %v289_v17 = vpop.f32.mrf.mxu3  ;;  %v224_v51 = vmax.f32 %v152_v44, %v219_v40 }
  0xc2   :  { %v339_v30 = vpop.f32.mrf.mxu1  ;;  %v290_v47 = vadd.f32 %v289_v17, %v270_v14 }
  0xc4   :  { %v295_v56 = vmax.f32 %v224_v51, %v290_v47 }
  0xc6   :  { %v353_v23 = vpop.f32.mrf.mxu2 }
  0xc7   :  { %v354_v27 = vadd.f32 %v353_v23, %v334_v20  ;;  %v336_v45 = vpop.f32.mrf.mxu0 }
  0xc9   :  { %v363_v32 = vmax.f32 %v292_v24, %v354_v27  ;;  %v358_v35 = vpop.f32.mrf.mxu3 }
  0xca   :  { %v359_v38 = vadd.f32 %v358_v35, %v339_v30  ;;  %v341_v54 = vpop.f32.mrf.mxu1 }
  0xcb   :  { %v371_v37 = vadd.f32 %v546_v28, %v363_v32 }
  0xcc   :  { %v365_v42 = vmax.f32 %v294_v36, %v359_v38 }
  0xcd   :  { %v375_v41 = vmax.f32 %v371_v37, 0.0 }
  0xce   :  { %v355_v46 = vpop.f32.mrf.mxu2  ;;  %v373_v49 = vadd.f32 %v546_v28, %v365_v42 }
  0xcf   :  { %v379_v48 = vpack.c.bf16 %v375_v41, %v375_v41  ;;  %v356_v50 = vadd.f32 %v355_v46, %v336_v45 }
  0xd0   :  { %v377_v52 = vmax.f32 %v373_v49, 0.0 }
  0xd1   :  { %384 = vst.msk [vmem:[%s748_s3] sm:$0xf] %vm383_vm1, %v379_v48  ;;  %v364_v53 = vmax.f32 %v293_v43, %v356_v50  ;;  %v360_v55 = vpop.f32.mrf.mxu3 }
  0xd2   :  { %v381_v57 = vpack.c.bf16 %v377_v52, %v377_v52  ;;  %v361_v59 = vadd.f32 %v360_v55, %v341_v54 }
  0xd3   :  { %v372_v58 = vadd.f32 %v546_v28, %v364_v53 }
  0xd4   :  { %386 = vst.msk [vmem:[%s748_s3 + $0x8] sm:$0xf] %vm383_vm1, %v381_v57  ;;  %v366_v61 = vmax.f32 %v295_v56, %v361_v59 }
  0xd5   :  { %v376_v60 = vmax.f32 %v372_v58, 0.0 }
  0xd6   :  { %v374_v63 = vadd.f32 %v546_v28, %v366_v61 }
  0xd7   :  { %v380_v62 = vpack.c.bf16 %v376_v60, %v376_v60 }
  0xd8   :  { %v378_v0 = vmax.f32 %v374_v63, 0.0 }
  0xd9   :  { %385 = vst.msk [vmem:[%s748_s3 + $0x4] sm:$0xf] %vm383_vm1, %v380_v62 }
  0xda   :  { %v382_v1 = vpack.c.bf16 %v378_v0, %v378_v0 }
  0xdc   :  { %387 = vst.msk [vmem:[%s748_s3 + $0xc] sm:$0xf] %vm383_vm1, %v382_v1 }

// kernel: simple_cnn_forward.5
= control target key start
LH: loop header
LB: loop body
LE: loop exit
PB: predicated region body
PF: predicated region fallthrough
CT: control target
= control target key end

     0   :  { %s3121_s0 = inlined_call_operand.vmem [shape: bf16[2,512], index: 0, kind: input, shape index: {}]   ;;  %s3122_s1 = inlined_call_operand.vmem [shape: bf16[512,512], index: 1, kind: input, shape index: {}]   ;;  %s3123_s2 = inlined_call_operand.vmem [shape: f32[1,512], index: 2, kind: input, shape index: {}]   ;;  %s3124_s3 = inlined_call_operand.vmem [shape: bf16[512,2], index: 3, kind: input, shape index: {}]   ;;  %s3125_s4 = inlined_call_operand.vmem [shape: f32[1,2], index: 4, kind: input, shape index: {}]   ;;  %s3126_s5 = inlined_call_operand.hbm [shape: f32[2,2], index: 5, kind: output, shape index: {}]  }
   0x1   :  { %v1470_v0 = vld [vmem:[%s3122_s1 + $0xe0] sm:$0xf]  ;;  %v2026_v1 = vld [vmem:[%s3122_s1 + $0xec] sm:$0xf0] }
   0x2   :  { %v1598_v2 = vld [vmem:[%s3122_s1 + $0x1e0] sm:$0xf]  ;;  %v1471_v3 = vor.u32 %v2026_v1, %v1470_v0  ;;  %v2058_v4 = vld [vmem:[%s3122_s1 + $0x1ec] sm:$0xf0] }
   0x3   :  { %v1726_v5 = vld [vmem:[%s3122_s1 + $0x2e0] sm:$0xf]  ;;  %v2090_v6 = vld [vmem:[%s3122_s1 + $0x2ec] sm:$0xf0]  ;;  %v1599_v7 = vor.u32 %v2058_v4, %v1598_v2 }
   0x4   :  { %v1727_v8 = vor.u32 %v2090_v6, %v1726_v5  ;;  %v1854_v9 = vld [vmem:[%s3122_s1 + $0x3e0] sm:$0xf]  ;;  %v2122_v10 = vld [vmem:[%s3122_s1 + $0x3ec] sm:$0xf0]  ;;  %810 = vmatpush.bf16.msra.mxu0 %v1471_v3 }
   0x5   :  { %v1454_v11 = vld [vmem:[%s3122_s1 + $0xc0] sm:$0xf]  ;;  %v1855_v12 = vor.u32 %v2122_v10, %v1854_v9  ;;  %v2022_v13 = vld [vmem:[%s3122_s1 + $0xcc] sm:$0xf0]  ;;  %823 = vmatpush.bf16.msra.mxu1 %v1599_v7 }
   0x6   :  { %v1582_v14 = vld [vmem:[%s3122_s1 + $0x1c0] sm:$0xf]  ;;  %v2054_v15 = vld [vmem:[%s3122_s1 + $0x1cc] sm:$0xf0]  ;;  %836 = vmatpush.bf16.msra.mxu2 %v1727_v8  ;;  %v1455_v16 = vor.u32 %v2022_v13, %v1454_v11 }
   0x7   :  { %v1583_v17 = vor.u32 %v2054_v15, %v1582_v14  ;;  %v1710_v18 = vld [vmem:[%s3122_s1 + $0x2c0] sm:$0xf]  ;;  %v2086_v19 = vld [vmem:[%s3122_s1 + $0x2cc] sm:$0xf0]  ;;  %849 = vmatpush.bf16.msra.mxu3 %v1855_v12 }
   0x8   :  { %v1838_v20 = vld [vmem:[%s3122_s1 + $0x3c0] sm:$0xf]  ;;  %v1711_v21 = vor.u32 %v2086_v19, %v1710_v18  ;;  %v2118_v22 = vld [vmem:[%s3122_s1 + $0x3cc] sm:$0xf0]  ;;  %811 = vmatpush.bf16.msra.mxu0 %v1455_v16 }
   0x9   :  { %v1438_v23 = vld [vmem:[%s3122_s1 + $0xa0] sm:$0xf]  ;;  %v2018_v24 = vld [vmem:[%s3122_s1 + $0xac] sm:$0xf0]  ;;  %v1839_v25 = vor.u32 %v2118_v22, %v1838_v20  ;;  %824 = vmatpush.bf16.msra.mxu1 %v1583_v17 }
   0xa   :  { %v1566_v26 = vld [vmem:[%s3122_s1 + $0x1a0] sm:$0xf]  ;;  %v2050_v27 = vld [vmem:[%s3122_s1 + $0x1ac] sm:$0xf0]  ;;  %v1439_v29 = vor.u32 %v2018_v24, %v1438_v23  ;;  %837 = vmatpush.bf16.msra.mxu2 %v1711_v21 }
   0xb   :  { %v1694_v28 = vld [vmem:[%s3122_s1 + $0x2a0] sm:$0xf]  ;;  %v2082_v30 = vld [vmem:[%s3122_s1 + $0x2ac] sm:$0xf0]  ;;  %v1567_v33 = vor.u32 %v2050_v27, %v1566_v26  ;;  %850 = vmatpush.bf16.msra.mxu3 %v1839_v25 }
   0xc   :  { %v1822_v31 = vld [vmem:[%s3122_s1 + $0x3a0] sm:$0xf]  ;;  %v2114_v32 = vld [vmem:[%s3122_s1 + $0x3ac] sm:$0xf0]  ;;  %v1695_v34 = vor.u32 %v2082_v30, %v1694_v28  ;;  %812 = vmatpush.bf16.msra.mxu0 %v1439_v29  ;;  %v2024_v28 = vld [vmem:[%s3122_s1 + $0xe4] sm:$0xf] }
   0xd   :  { %v1422_v35 = vld [vmem:[%s3122_s1 + $0x80] sm:$0xf]  ;;  %v2014_v36 = vld [vmem:[%s3122_s1 + $0x8c] sm:$0xf0]  ;;  %v1823_v38 = vor.u32 %v2114_v32, %v1822_v31  ;;  %825 = vmatpush.bf16.msra.mxu1 %v1567_v33  ;;  %v1472_v29 = vld [vmem:[%s3122_s1 + $0xf0] sm:$0xf0] }
   0xe   :  { %v1550_v37 = vld [vmem:[%s3122_s1 + $0x180] sm:$0xf]  ;;  %v2046_v39 = vld [vmem:[%s3122_s1 + $0x18c] sm:$0xf0]  ;;  %v1423_v44 = vor.u32 %v2014_v36, %v1422_v35  ;;  %838 = vmatpush.bf16.msra.mxu2 %v1695_v34  ;;  %v2056_v30 = vld [vmem:[%s3122_s1 + $0x1e4] sm:$0xf] }
   0xf   :  { %v1678_v40 = vld [vmem:[%s3122_s1 + $0x280] sm:$0xf]  ;;  %v2078_v41 = vld [vmem:[%s3122_s1 + $0x28c] sm:$0xf0]  ;;  %v1551_v45 = vor.u32 %v2046_v39, %v1550_v37  ;;  %851 = vmatpush.bf16.msra.mxu3 %v1823_v38  ;;  %v1600_v32 = vld [vmem:[%s3122_s1 + $0x1f0] sm:$0xf0] }
  0x10   :  { %v1806_v42 = vld [vmem:[%s3122_s1 + $0x380] sm:$0xf]  ;;  %v2110_v43 = vld [vmem:[%s3122_s1 + $0x38c] sm:$0xf0]  ;;  %v1679_v46 = vor.u32 %v2078_v41, %v1678_v40  ;;  %813 = vmatpush.bf16.msra.mxu0 %v1423_v44  ;;  %v2088_v33 = vld [vmem:[%s3122_s1 + $0x2e4] sm:$0xf]  ;;  %v1475_v40 = vor.u32 %v2024_v28, %v1472_v29  ;;  %v1603_v41 = vor.u32 %v2056_v30, %v1600_v32 }
  0x11   :  { %v1406_v47 = vld [vmem:[%s3122_s1 + $0x60] sm:$0xf]  ;;  %v2010_v48 = vld [vmem:[%s3122_s1 + $0x6c] sm:$0xf0]  ;;  %v1807_v50 = vor.u32 %v2110_v43, %v1806_v42  ;;  %826 = vmatpush.bf16.msra.mxu1 %v1551_v45  ;;  %v1728_v34 = vld [vmem:[%s3122_s1 + $0x2f0] sm:$0xf0] }
  0x12   :  { %v1534_v49 = vld [vmem:[%s3122_s1 + $0x160] sm:$0xf]  ;;  %v2042_v51 = vld [vmem:[%s3122_s1 + $0x16c] sm:$0xf0]  ;;  %v1407_v56 = vor.u32 %v2010_v48, %v1406_v47  ;;  %839 = vmatpush.bf16.msra.mxu2 %v1679_v46  ;;  %v2120_v37 = vld [vmem:[%s3122_s1 + $0x3e4] sm:$0xf]  ;;  %v1731_v42 = vor.u32 %v2088_v33, %v1728_v34 }
  0x13   :  { %v1662_v52 = vld [vmem:[%s3122_s1 + $0x260] sm:$0xf]  ;;  %v2074_v53 = vld [vmem:[%s3122_s1 + $0x26c] sm:$0xf0]  ;;  %v1535_v57 = vor.u32 %v2042_v51, %v1534_v49  ;;  %852 = vmatpush.bf16.msra.mxu3 %v1807_v50  ;;  %v1856_v38 = vld [vmem:[%s3122_s1 + $0x3f0] sm:$0xf0] }
  0x14   :  { %v1790_v54 = vld [vmem:[%s3122_s1 + $0x360] sm:$0xf]  ;;  %v2106_v55 = vld [vmem:[%s3122_s1 + $0x36c] sm:$0xf0]  ;;  %v1663_v58 = vor.u32 %v2074_v53, %v1662_v52  ;;  %814 = vmatpush.bf16.msra.mxu0 %v1407_v56  ;;  %v2020_v43 = vld [vmem:[%s3122_s1 + $0xc4] sm:$0xf]  ;;  %v1859_v46 = vor.u32 %v2120_v37, %v1856_v38 }
  0x15   :  { %v1390_v59 = vld [vmem:[%s3122_s1 + $0x40] sm:$0xf]  ;;  %v2006_v60 = vld [vmem:[%s3122_s1 + $0x4c] sm:$0xf0]  ;;  %v1791_v62 = vor.u32 %v2106_v55, %v1790_v54  ;;  %827 = vmatpush.bf16.msra.mxu1 %v1535_v57  ;;  %v1456_v44 = vld [vmem:[%s3122_s1 + $0xd0] sm:$0xf0] }
  0x16   :  { %v1518_v61 = vld [vmem:[%s3122_s1 + $0x140] sm:$0xf]  ;;  %v2038_v63 = vld [vmem:[%s3122_s1 + $0x14c] sm:$0xf0]  ;;  %v1391_v4 = vor.u32 %v2006_v60, %v1390_v59  ;;  %840 = vmatpush.bf16.msra.mxu2 %v1663_v58  ;;  %v2052_v45 = vld [vmem:[%s3122_s1 + $0x1c4] sm:$0xf]  ;;  %v1459_v53 = vor.u32 %v2020_v43, %v1456_v44 }
  0x17   :  { %v1646_v0 = vld [vmem:[%s3122_s1 + $0x240] sm:$0xf]  ;;  %v2070_v1 = vld [vmem:[%s3122_s1 + $0x24c] sm:$0xf0]  ;;  %v1519_v5 = vor.u32 %v2038_v63, %v1518_v61  ;;  %853 = vmatpush.bf16.msra.mxu3 %v1791_v62  ;;  %v1584_v47 = vld [vmem:[%s3122_s1 + $0x1d0] sm:$0xf0] }
  0x18   :  { %v1774_v2 = vld [vmem:[%s3122_s1 + $0x340] sm:$0xf]  ;;  %v2102_v3 = vld [vmem:[%s3122_s1 + $0x34c] sm:$0xf0]  ;;  %v1647_v6 = vor.u32 %v2070_v1, %v1646_v0  ;;  %815 = vmatpush.bf16.msra.mxu0 %v1391_v4  ;;  %v2084_v48 = vld [vmem:[%s3122_s1 + $0x2c4] sm:$0xf]  ;;  %v1587_v54 = vor.u32 %v2052_v45, %v1584_v47 }
  0x19   :  { %v1374_v7 = vld [vmem:[%s3122_s1 + $0x20] sm:$0xf]  ;;  %v2002_v8 = vld [vmem:[%s3122_s1 + $0x2c] sm:$0xf0]  ;;  %v1775_v10 = vor.u32 %v2102_v3, %v1774_v2  ;;  %828 = vmatpush.bf16.msra.mxu1 %v1519_v5  ;;  %v1712_v49 = vld [vmem:[%s3122_s1 + $0x2d0] sm:$0xf0] }
  0x1a   :  { %v1502_v9 = vld [vmem:[%s3122_s1 + $0x120] sm:$0xf]  ;;  %v2034_v11 = vld [vmem:[%s3122_s1 + $0x12c] sm:$0xf0]  ;;  %v1375_v16 = vor.u32 %v2002_v8, %v1374_v7  ;;  %841 = vmatpush.bf16.msra.mxu2 %v1647_v6  ;;  %v2116_v50 = vld [vmem:[%s3122_s1 + $0x3c4] sm:$0xf]  ;;  %v1715_v55 = vor.u32 %v2084_v48, %v1712_v49 }
  0x1b   :  { %v1630_v12 = vld [vmem:[%s3122_s1 + $0x220] sm:$0xf]  ;;  %v2066_v13 = vld [vmem:[%s3122_s1 + $0x22c] sm:$0xf0]  ;;  %v1503_v19 = vor.u32 %v2034_v11, %v1502_v9  ;;  %854 = vmatpush.bf16.msra.mxu3 %v1775_v10  ;;  %v1840_v51 = vld [vmem:[%s3122_s1 + $0x3d0] sm:$0xf0] }
  0x1c   :  { %v1758_v14 = vld [vmem:[%s3122_s1 + $0x320] sm:$0xf]  ;;  %v2098_v15 = vld [vmem:[%s3122_s1 + $0x32c] sm:$0xf0]  ;;  %v1631_v20 = vor.u32 %v2066_v13, %v1630_v12  ;;  %816 = vmatpush.bf16.msra.mxu0 %v1375_v16  ;;  %v2016_v56 = vld [vmem:[%s3122_s1 + $0xa4] sm:$0xf]  ;;  %v1843_v59 = vor.u32 %v2116_v50, %v1840_v51 }
  0x1d   :  { %v1358_v17 = vld [vmem:[%s3122_s1] sm:$0xf]  ;;  %v1998_v18 = vld [vmem:[%s3122_s1 + $0xc] sm:$0xf0]  ;;  %v1759_v24 = vor.u32 %v2098_v15, %v1758_v14  ;;  %829 = vmatpush.bf16.msra.mxu1 %v1503_v19  ;;  %v1440_v57 = vld [vmem:[%s3122_s1 + $0xb0] sm:$0xf0] }
  0x1e   :  { %v1486_v21 = vld [vmem:[%s3122_s1 + $0x100] sm:$0xf]  ;;  %v2030_v22 = vld [vmem:[%s3122_s1 + $0x10c] sm:$0xf0]  ;;  %v1359_v31 = vor.u32 %v1998_v18, %v1358_v17  ;;  %842 = vmatpush.bf16.msra.mxu2 %v1631_v20  ;;  %v2048_v58 = vld [vmem:[%s3122_s1 + $0x1a4] sm:$0xf]  ;;  %v1443_v1 = vor.u32 %v2016_v56, %v1440_v57 }
  0x1f   :  { %v1614_v23 = vld [vmem:[%s3122_s1 + $0x200] sm:$0xf]  ;;  %v2062_v25 = vld [vmem:[%s3122_s1 + $0x20c] sm:$0xf0]  ;;  %v1487_v35 = vor.u32 %v2030_v22, %v1486_v21  ;;  %855 = vmatpush.bf16.msra.mxu3 %v1759_v24  ;;  %v1568_v60 = vld [vmem:[%s3122_s1 + $0x1b0] sm:$0xf0] }
  0x20   :  { %v1742_v26 = vld [vmem:[%s3122_s1 + $0x300] sm:$0xf]  ;;  %v2094_v27 = vld [vmem:[%s3122_s1 + $0x30c] sm:$0xf0]  ;;  %v1615_v36 = vor.u32 %v2062_v25, %v1614_v23  ;;  %817 = vmatpush.bf16.msra.mxu0 %v1359_v31  ;;  %v2080_v61 = vld [vmem:[%s3122_s1 + $0x2a4] sm:$0xf]  ;;  %v1571_v3 = vor.u32 %v2048_v58, %v1568_v60 }
  0x21   :  { %v1743_v39 = vor.u32 %v2094_v27, %v1742_v26  ;;  %830 = vmatpush.bf16.msra.mxu1 %v1487_v35  ;;  %v21_v52 = vld [vmem:[%s3121_s0] sm:$0xf]  ;;  %v1696_v62 = vld [vmem:[%s3122_s1 + $0x2b0] sm:$0xf0]  ;;  %v2112_v63 = vld [vmem:[%s3122_s1 + $0x3a4] sm:$0xf] }
  0x22   :  { %843 = vmatpush.bf16.msra.mxu2 %v1615_v36  ;;  %161 = vst [vmem:[#allocation1] ss:$9 sm:$0xff] %v21_v52  ;;  %v1824_v0 = vld [vmem:[%s3122_s1 + $0x3b0] sm:$0xf0]  ;;  %v2012_v2 = vld [vmem:[%s3122_s1 + $0x84] sm:$0xf]  ;;  %v1699_v4 = vor.u32 %v2080_v61, %v1696_v62 }
  0x23   :  { %856 = vmatpush.bf16.msra.mxu3 %v1743_v39  ;;  %v1424_v5 = vld [vmem:[%s3122_s1 + $0x90] sm:$0xf0]  ;;  %v2044_v6 = vld [vmem:[%s3122_s1 + $0x184] sm:$0xf]  ;;  %v1827_v8 = vor.u32 %v2112_v63, %v1824_v0 }
  0x24   :  { %862 = vmatpush.bf16.msrb.mxu0 %v1475_v40  ;;  %v1552_v7 = vld [vmem:[%s3122_s1 + $0x190] sm:$0xf0]  ;;  %v2076_v9 = vld [vmem:[%s3122_s1 + $0x284] sm:$0xf]  ;;  %v1427_v15 = vor.u32 %v2012_v2, %v1424_v5  ;;  %v2027_v2 = vld [vmem:[%s3122_s1 + $0xf4] sm:$0xf0] }
  0x25   :  { %875 = vmatpush.bf16.msrb.mxu1 %v1603_v41  ;;  %v1680_v10 = vld [vmem:[%s3122_s1 + $0x290] sm:$0xf0]  ;;  %v2108_v11 = vld [vmem:[%s3122_s1 + $0x384] sm:$0xf]  ;;  %v1555_v18 = vor.u32 %v2044_v6, %v1552_v7  ;;  %v2059_v5 = vld [vmem:[%s3122_s1 + $0x1f4] sm:$0xf0] }
  0x26   :  { %888 = vmatpush.bf16.msrb.mxu2 %v1731_v42  ;;  %v1808_v12 = vld [vmem:[%s3122_s1 + $0x390] sm:$0xf0]  ;;  %v1683_v19 = vor.u32 %v2076_v9, %v1680_v10  ;;  %v2008_v20 = vld [vmem:[%s3122_s1 + $0x64] sm:$0xf]  ;;  %v1734_v6 = vld [vmem:[%s3122_s1 + $0x2e8] sm:$0xf] }
  0x27   :  { %901 = vmatpush.bf16.msrb.mxu3 %v1859_v46  ;;  %v1408_v21 = vld [vmem:[%s3122_s1 + $0x70] sm:$0xf0]  ;;  %v2040_v22 = vld [vmem:[%s3122_s1 + $0x164] sm:$0xf]  ;;  %v1811_v23 = vor.u32 %v2108_v11, %v1808_v12  ;;  %v2091_v7 = vld [vmem:[%s3122_s1 + $0x2f4] sm:$0xf0] }
  0x28   :  { %863 = vmatpush.bf16.msrb.mxu0 %v1459_v53  ;;  %v1536_v24 = vld [vmem:[%s3122_s1 + $0x170] sm:$0xf0]  ;;  %v2072_v25 = vld [vmem:[%s3122_s1 + $0x264] sm:$0xf]  ;;  %v1411_v29 = vor.u32 %v2008_v20, %v1408_v21  ;;  %v1862_v10 = vld [vmem:[%s3122_s1 + $0x3e8] sm:$0xf] }
  0x29   :  { %876 = vmatpush.bf16.msrb.mxu1 %v1587_v54  ;;  %v2506_v13 = vld [vmem:[#allocation1 + $0x12] sm:$0xff]  ;;  %v2508_v14 = vld [vmem:[#allocation1] sm:$0xff]  ;;  %v2513_v17 = vld [vmem:[#allocation1 + $0x9] sm:$0xff]  ;;  %v1539_v30 = vor.u32 %v2040_v22, %v1536_v24 }
  0x2a   :  { %889 = vmatpush.bf16.msrb.mxu2 %v1715_v55  ;;  %v2511_v16 = vld [vmem:[#allocation1 + $0x1b] sm:$0xff]  ;;  %v1664_v26 = vld [vmem:[%s3122_s1 + $0x270] sm:$0xf0]  ;;  %818 = vmatmul.bf16.vlgmr.msra.gmra.mxu0 %v2508_v14  ;;  %v2104_v27 = vld [vmem:[%s3122_s1 + $0x364] sm:$0xf] }
  0x2b   :  { %902 = vmatpush.bf16.msrb.mxu3 %v1843_v59  ;;  %844 = vmatmul.bf16.vlgmr.msra.gmra.mxu2 %v2506_v13  ;;  %v1792_v28 = vld [vmem:[%s3122_s1 + $0x370] sm:$0xf0]  ;;  %v1667_v31 = vor.u32 %v2072_v25, %v1664_v26  ;;  %v2004_v32 = vld [vmem:[%s3122_s1 + $0x44] sm:$0xf]  ;;  %v2123_v11 = vld [vmem:[%s3122_s1 + $0x3f4] sm:$0xf0] }
  0x2c   :  { %864 = vmatpush.bf16.msrb.mxu0 %v1443_v1  ;;  %857 = vmatmul.bf16.vlgmr.msra.gmra.mxu3 %v2511_v16  ;;  %v1392_v33 = vld [vmem:[%s3122_s1 + $0x50] sm:$0xf0]  ;;  %v2036_v34 = vld [vmem:[%s3122_s1 + $0x144] sm:$0xf]  ;;  %v1795_v35 = vor.u32 %v2104_v27, %v1792_v28  ;;  %v1478_v1 = vld [vmem:[%s3122_s1 + $0xe8] sm:$0xf] }
  0x2d   :  { %877 = vmatpush.bf16.msrb.mxu1 %v1571_v3  ;;  %v1520_v36 = vld [vmem:[%s3122_s1 + $0x150] sm:$0xf0]  ;;  %v2068_v37 = vld [vmem:[%s3122_s1 + $0x244] sm:$0xf]  ;;  %v1395_v41 = vor.u32 %v2004_v32, %v1392_v33  ;;  %v1606_v3 = vld [vmem:[%s3122_s1 + $0x1e8] sm:$0xf] }
  0x2e   :  { %890 = vmatpush.bf16.msrb.mxu2 %v1699_v4  ;;  %831 = vmatmul.bf16.vlgmr.msra.gmra.mxu1 %v2513_v17  ;;  %v1648_v38 = vld [vmem:[%s3122_s1 + $0x250] sm:$0xf0]  ;;  %v2100_v39 = vld [vmem:[%s3122_s1 + $0x344] sm:$0xf]  ;;  %v1523_v42 = vor.u32 %v2036_v34, %v1520_v36  ;;  %v1462_v20 = vld [vmem:[%s3122_s1 + $0xc8] sm:$0xf] }
  0x2f   :  { %903 = vmatpush.bf16.msrb.mxu3 %v1827_v8  ;;  %v1776_v40 = vld [vmem:[%s3122_s1 + $0x350] sm:$0xf0]  ;;  %v1651_v43 = vor.u32 %v2068_v37, %v1648_v38  ;;  %v2000_v44 = vld [vmem:[%s3122_s1 + $0x24] sm:$0xf]  ;;  %v2023_v21 = vld [vmem:[%s3122_s1 + $0xd4] sm:$0xf0] }
  0x30   :  { %865 = vmatpush.bf16.msrb.mxu0 %v1427_v15  ;;  %v1376_v45 = vld [vmem:[%s3122_s1 + $0x30] sm:$0xf0]  ;;  %v2032_v46 = vld [vmem:[%s3122_s1 + $0x124] sm:$0xf]  ;;  %v1779_v47 = vor.u32 %v2100_v39, %v1776_v40  ;;  %v1479_v15 = vor.u32 %v2027_v2, %v1478_v1  ;;  %v1590_v22 = vld [vmem:[%s3122_s1 + $0x1c8] sm:$0xf] }
  0x31   :  { %878 = vmatpush.bf16.msrb.mxu1 %v1555_v18  ;;  %v1504_v48 = vld [vmem:[%s3122_s1 + $0x130] sm:$0xf0]  ;;  %v2064_v49 = vld [vmem:[%s3122_s1 + $0x224] sm:$0xf]  ;;  %v1379_v53 = vor.u32 %v2000_v44, %v1376_v45  ;;  %v1607_v18 = vor.u32 %v2059_v5, %v1606_v3  ;;  %v2055_v24 = vld [vmem:[%s3122_s1 + $0x1d4] sm:$0xf0] }
  0x32   :  { %891 = vmatpush.bf16.msrb.mxu2 %v1683_v19  ;;  %v1632_v50 = vld [vmem:[%s3122_s1 + $0x230] sm:$0xf0]  ;;  %v2096_v51 = vld [vmem:[%s3122_s1 + $0x324] sm:$0xf]  ;;  %v1507_v56 = vor.u32 %v2032_v46, %v1504_v48  ;;  %v1735_v19 = vor.u32 %v2091_v7, %v1734_v6  ;;  %v1718_v25 = vld [vmem:[%s3122_s1 + $0x2c8] sm:$0xf] }
  0x33   :  { %904 = vmatpush.bf16.msrb.mxu3 %v1811_v23  ;;  %v1760_v52 = vld [vmem:[%s3122_s1 + $0x330] sm:$0xf0]  ;;  %v1996_v54 = vld [vmem:[%s3122_s1 + $0x4] sm:$0xf]  ;;  %v1635_v57 = vor.u32 %v2064_v49, %v1632_v50  ;;  %v1863_v23 = vor.u32 %v2123_v11, %v1862_v10  ;;  %v2087_v26 = vld [vmem:[%s3122_s1 + $0x2d4] sm:$0xf0] }
  0x34   :  { %866 = vmatpush.bf16.msrb.mxu0 %v1411_v29  ;;  %v1360_v55 = vld [vmem:[%s3122_s1 + $0x10] sm:$0xf0]  ;;  %v2028_v58 = vld [vmem:[%s3122_s1 + $0x104] sm:$0xf]  ;;  %v1763_v61 = vor.u32 %v2096_v51, %v1760_v52  ;;  %v1846_v27 = vld [vmem:[%s3122_s1 + $0x3c8] sm:$0xf]  ;;  %v1463_v29 = vor.u32 %v2023_v21, %v1462_v20 }
  0x35   :  { %879 = vmatpush.bf16.msrb.mxu1 %v1539_v30  ;;  %v1488_v59 = vld [vmem:[%s3122_s1 + $0x110] sm:$0xf0]  ;;  %v2060_v60 = vld [vmem:[%s3122_s1 + $0x204] sm:$0xf]  ;;  %v1363_v4 = vor.u32 %v1996_v54, %v1360_v55  ;;  %v2119_v28 = vld [vmem:[%s3122_s1 + $0x3d4] sm:$0xf0]  ;;  %v1591_v30 = vor.u32 %v2055_v24, %v1590_v22 }
  0x36   :  { %892 = vmatpush.bf16.msrb.mxu2 %v1667_v31  ;;  %v1616_v62 = vld [vmem:[%s3122_s1 + $0x210] sm:$0xf0]  ;;  %v2092_v63 = vld [vmem:[%s3122_s1 + $0x304] sm:$0xf]  ;;  %v1491_v8 = vor.u32 %v2028_v58, %v1488_v59  ;;  %v1719_v31 = vor.u32 %v2087_v26, %v1718_v25  ;;  %v1446_v32 = vld [vmem:[%s3122_s1 + $0xa8] sm:$0xf] }
  0x37   :  { %905 = vmatpush.bf16.msrb.mxu3 %v1795_v35  ;;  %v1744_v0 = vld [vmem:[%s3122_s1 + $0x310] sm:$0xf0]  ;;  %v1619_v9 = vor.u32 %v2060_v60, %v1616_v62  ;;  %v2019_v33 = vld [vmem:[%s3122_s1 + $0xb4] sm:$0xf0]  ;;  %v1574_v34 = vld [vmem:[%s3122_s1 + $0x1a8] sm:$0xf]  ;;  %v1847_v35 = vor.u32 %v2119_v28, %v1846_v27 }
  0x38   :  { %867 = vmatpush.bf16.msrb.mxu0 %v1395_v41  ;;  %v1747_v12 = vor.u32 %v2092_v63, %v1744_v0  ;;  %v2051_v36 = vld [vmem:[%s3122_s1 + $0x1b4] sm:$0xf0]  ;;  %v1702_v37 = vld [vmem:[%s3122_s1 + $0x2a8] sm:$0xf]  ;;  %v1447_v41 = vor.u32 %v2019_v33, %v1446_v32 }
  0x39   :  { %880 = vmatpush.bf16.msrb.mxu1 %v1523_v42  ;;  %v2083_v38 = vld [vmem:[%s3122_s1 + $0x2b4] sm:$0xf0]  ;;  %v1830_v39 = vld [vmem:[%s3122_s1 + $0x3a8] sm:$0xf]  ;;  %v1575_v42 = vor.u32 %v2051_v36, %v1574_v34 }
  0x3a   :  { %893 = vmatpush.bf16.msrb.mxu2 %v1651_v43  ;;  %v2115_v40 = vld [vmem:[%s3122_s1 + $0x3b4] sm:$0xf0]  ;;  %v1703_v43 = vor.u32 %v2083_v38, %v1702_v37  ;;  %v1430_v44 = vld [vmem:[%s3122_s1 + $0x88] sm:$0xf] }
  0x3b   :  { %906 = vmatpush.bf16.msrb.mxu3 %v1779_v47  ;;  %v2015_v45 = vld [vmem:[%s3122_s1 + $0x94] sm:$0xf0]  ;;  %v1558_v46 = vld [vmem:[%s3122_s1 + $0x188] sm:$0xf]  ;;  %v1831_v47 = vor.u32 %v2115_v40, %v1830_v39 }
  0x3c   :  { %868 = vmatpush.bf16.msrb.mxu0 %v1379_v53  ;;  %v2047_v48 = vld [vmem:[%s3122_s1 + $0x194] sm:$0xf0]  ;;  %v1686_v49 = vld [vmem:[%s3122_s1 + $0x288] sm:$0xf]  ;;  %v1431_v53 = vor.u32 %v2015_v45, %v1430_v44 }
  0x3d   :  { %881 = vmatpush.bf16.msrb.mxu1 %v1507_v56  ;;  %v2079_v50 = vld [vmem:[%s3122_s1 + $0x294] sm:$0xf0]  ;;  %v1814_v51 = vld [vmem:[%s3122_s1 + $0x388] sm:$0xf]  ;;  %v1559_v54 = vor.u32 %v2047_v48, %v1558_v46 }
  0x3e   :  { %894 = vmatpush.bf16.msrb.mxu2 %v1635_v57  ;;  %v2111_v52 = vld [vmem:[%s3122_s1 + $0x394] sm:$0xf0]  ;;  %v1687_v55 = vor.u32 %v2079_v50, %v1686_v49  ;;  %v1414_v56 = vld [vmem:[%s3122_s1 + $0x68] sm:$0xf] }
  0x3f   :  { %907 = vmatpush.bf16.msrb.mxu3 %v1763_v61  ;;  %v2011_v57 = vld [vmem:[%s3122_s1 + $0x74] sm:$0xf0]  ;;  %v1542_v58 = vld [vmem:[%s3122_s1 + $0x168] sm:$0xf]  ;;  %v1815_v59 = vor.u32 %v2111_v52, %v1814_v51 }
  0x40   :  { %869 = vmatpush.bf16.msrb.mxu0 %v1363_v4  ;;  %v2043_v60 = vld [vmem:[%s3122_s1 + $0x174] sm:$0xf0]  ;;  %v1670_v61 = vld [vmem:[%s3122_s1 + $0x268] sm:$0xf]  ;;  %v1415_v1 = vor.u32 %v2011_v57, %v1414_v56 }
  0x41   :  { %882 = vmatpush.bf16.msrb.mxu1 %v1491_v8  ;;  %v2075_v62 = vld [vmem:[%s3122_s1 + $0x274] sm:$0xf0]  ;;  %v1798_v63 = vld [vmem:[%s3122_s1 + $0x368] sm:$0xf]  ;;  %v1543_v2 = vor.u32 %v2043_v60, %v1542_v58 }
  0x42   :  { %895 = vmatpush.bf16.msrb.mxu2 %v1619_v9  ;;  %v2107_v0 = vld [vmem:[%s3122_s1 + $0x374] sm:$0xf0]  ;;  %v1671_v3 = vor.u32 %v2075_v62, %v1670_v61  ;;  %v1398_v4 = vld [vmem:[%s3122_s1 + $0x48] sm:$0xf] }
  0x43   :  { %908 = vmatpush.bf16.msrb.mxu3 %v1747_v12  ;;  %870 = vmatmul.bf16.vlgmr.msrb.gmra.mxu0 %v2508_v14  ;;  %v2007_v5 = vld [vmem:[%s3122_s1 + $0x54] sm:$0xf0]  ;;  %v1526_v6 = vld [vmem:[%s3122_s1 + $0x148] sm:$0xf]  ;;  %v1799_v7 = vor.u32 %v2107_v0, %v1798_v63 }
  0x44   :  { %914 = vmatpush.bf16.msra.mxu0 %v1479_v15  ;;  %883 = vmatmul.bf16.vlgmr.msrb.gmra.mxu1 %v2513_v17  ;;  %v2039_v8 = vld [vmem:[%s3122_s1 + $0x154] sm:$0xf0]  ;;  %v1654_v9 = vld [vmem:[%s3122_s1 + $0x248] sm:$0xf]  ;;  %v1399_v15 = vor.u32 %v2007_v5, %v1398_v4 }
  0x45   :  { %927 = vmatpush.bf16.msra.mxu1 %v1607_v18  ;;  %896 = vmatmul.bf16.vlgmr.msrb.gmra.mxu2 %v2506_v13  ;;  %v2071_v10 = vld [vmem:[%s3122_s1 + $0x254] sm:$0xf0]  ;;  %v1782_v11 = vld [vmem:[%s3122_s1 + $0x348] sm:$0xf] }
  0x46   :  { %940 = vmatpush.bf16.msra.mxu2 %v1735_v19  ;;  %909 = vmatmul.bf16.vlgmr.msrb.gmra.mxu3 %v2511_v16  ;;  %v2103_v12 = vld [vmem:[%s3122_s1 + $0x354] sm:$0xf0]  ;;  %v1382_v18 = vld [vmem:[%s3122_s1 + $0x28] sm:$0xf]  ;;  %v1527_v19 = vor.u32 %v2039_v8, %v1526_v6  ;;  %v1655_v20 = vor.u32 %v2071_v10, %v1654_v9 }
  0x47   :  { %953 = vmatpush.bf16.msra.mxu3 %v1863_v23  ;;  %v2003_v21 = vld [vmem:[%s3122_s1 + $0x34] sm:$0xf0]  ;;  %v1510_v22 = vld [vmem:[%s3122_s1 + $0x128] sm:$0xf]  ;;  %v1783_v24 = vor.u32 %v2103_v12, %v1782_v11 }
  0x48   :  { %915 = vmatpush.bf16.msra.mxu0 %v1463_v29  ;;  %v2035_v23 = vld [vmem:[%s3122_s1 + $0x134] sm:$0xf0]  ;;  %v1638_v25 = vld [vmem:[%s3122_s1 + $0x228] sm:$0xf] }
  0x49   :  { %928 = vmatpush.bf16.msra.mxu1 %v1591_v30  ;;  %v2067_v26 = vld [vmem:[%s3122_s1 + $0x234] sm:$0xf0]  ;;  %v1766_v27 = vld [vmem:[%s3122_s1 + $0x328] sm:$0xf] }
  0x4a   :  { %941 = vmatpush.bf16.msra.mxu2 %v1719_v31  ;;  %v2099_v28 = vld [vmem:[%s3122_s1 + $0x334] sm:$0xf0] }
  0x4b   :  { %954 = vmatpush.bf16.msra.mxu3 %v1847_v35 }
  0x4c   :  { %916 = vmatpush.bf16.msra.mxu0 %v1447_v41 }
  0x4d   :  { %929 = vmatpush.bf16.msra.mxu1 %v1575_v42 }
  0x4e   :  { %942 = vmatpush.bf16.msra.mxu2 %v1703_v43 }
  0x4f   :  { %955 = vmatpush.bf16.msra.mxu3 %v1831_v47 }
  0x50   :  { %917 = vmatpush.bf16.msra.mxu0 %v1431_v53 }
  0x51   :  { %930 = vmatpush.bf16.msra.mxu1 %v1559_v54 }
  0x52   :  { %943 = vmatpush.bf16.msra.mxu2 %v1687_v55 }
  0x53   :  { %956 = vmatpush.bf16.msra.mxu3 %v1815_v59 }
  0x54   :  { %918 = vmatpush.bf16.msra.mxu0 %v1415_v1 }
  0x55   :  { %931 = vmatpush.bf16.msra.mxu1 %v1543_v2 }
  0x56   :  { %944 = vmatpush.bf16.msra.mxu2 %v1671_v3 }
  0x57   :  { %957 = vmatpush.bf16.msra.mxu3 %v1799_v7 }
  0x58   :  { %10 = vsyncpa [#allocation3], 0  ;;  %919 = vmatpush.bf16.msra.mxu0 %v1399_v15  ;;  %v1383_v29 = vor.u32 %v2003_v21, %v1382_v18  ;;  %v1366_v30 = vld [vmem:[%s3122_s1 + $0x8] sm:$0xf]  ;;  %v1999_v31 = vld [vmem:[%s3122_s1 + $0x14] sm:$0xf0]  ;;  %v1511_v32 = vor.u32 %v2035_v23, %v1510_v22  ;;  %v1639_v33 = vor.u32 %v2067_v26, %v1638_v25  ;;  %v1767_v37 = vor.u32 %v2099_v28, %v1766_v27 }
  0x59   :  { %932 = vmatpush.bf16.msra.mxu1 %v1527_v19  ;;  %v1494_v34 = vld [vmem:[%s3122_s1 + $0x108] sm:$0xf]  ;;  %v2031_v35 = vld [vmem:[%s3122_s1 + $0x114] sm:$0xf0]  ;;  %v2025_v41 = vld [vmem:[%s3122_s1 + $0xec] sm:$0xf]  ;;  %v1367_v44 = vor.u32 %v1999_v31, %v1366_v30 }
  0x5a   :  { %945 = vmatpush.bf16.msra.mxu2 %v1655_v20  ;;  %v1622_v36 = vld [vmem:[%s3122_s1 + $0x208] sm:$0xf]  ;;  %v2063_v38 = vld [vmem:[%s3122_s1 + $0x214] sm:$0xf0]  ;;  %v1480_v42 = vld [vmem:[%s3122_s1 + $0xf8] sm:$0xf0]  ;;  %v1495_v48 = vor.u32 %v2031_v35, %v1494_v34 }
  0x5b   :  { %958 = vmatpush.bf16.msra.mxu3 %v1783_v24  ;;  %v1750_v39 = vld [vmem:[%s3122_s1 + $0x308] sm:$0xf]  ;;  %v2095_v40 = vld [vmem:[%s3122_s1 + $0x314] sm:$0xf0]  ;;  %v2057_v43 = vld [vmem:[%s3122_s1 + $0x1ec] sm:$0xf]  ;;  %v1623_v49 = vor.u32 %v2063_v38, %v1622_v36  ;;  %v1483_v53 = vor.u32 %v2025_v41, %v1480_v42 }
  0x5c   :  { %920 = vmatpush.bf16.msra.mxu0 %v1383_v29  ;;  %v1608_v45 = vld [vmem:[%s3122_s1 + $0x1f8] sm:$0xf0]  ;;  %v2089_v46 = vld [vmem:[%s3122_s1 + $0x2ec] sm:$0xf]  ;;  %v1751_v52 = vor.u32 %v2095_v40, %v1750_v39  ;;  %s2184_s28 = smov [#allocation2]   ;;  %s1347_s7 = sshll.u32 %s3126_s5, 4  ;;  %s1348_s7 = int_to_ptr.hbm [resolvable:$true] %s1347_s7 }
  0x5d   :  { %v1736_v47 = vld [vmem:[%s3122_s1 + $0x2f8] sm:$0xf0]  ;;  %933 = vmatpush.bf16.msra.mxu1 %v1511_v32  ;;  %v2121_v50 = vld [vmem:[%s3122_s1 + $0x3ec] sm:$0xf]  ;;  %v1611_v54 = vor.u32 %v2057_v43, %v1608_v45  ;;  %s1345_s29 = sshll.u32 %s2184_s28, 4  ;;  %vm1338_vm0 = vcmask 9216   ;;  %s1346_s29 = int_to_ptr.vmem [resolvable:$true] %s1345_s29 }
  0x5e   :  { %946 = vmatpush.bf16.msra.mxu2 %v1639_v33  ;;  %v1864_v51 = vld [vmem:[%s3122_s1 + $0x3f8] sm:$0xf0]  ;;  %v1739_v55 = vor.u32 %v2089_v46, %v1736_v47  ;;  %v2021_v56 = vld [vmem:[%s3122_s1 + $0xcc] sm:$0xf] }
  0x5f   :  { %959 = vmatpush.bf16.msra.mxu3 %v1767_v37  ;;  %v1464_v57 = vld [vmem:[%s3122_s1 + $0xd8] sm:$0xf0]  ;;  %v2053_v58 = vld [vmem:[%s3122_s1 + $0x1cc] sm:$0xf]  ;;  %v1867_v59 = vor.u32 %v2121_v50, %v1864_v51 }
  0x60   :  { %921 = vmatpush.bf16.msra.mxu0 %v1367_v44  ;;  %v1592_v60 = vld [vmem:[%s3122_s1 + $0x1d8] sm:$0xf0]  ;;  %v2085_v61 = vld [vmem:[%s3122_s1 + $0x2cc] sm:$0xf]  ;;  %v1467_v1 = vor.u32 %v2021_v56, %v1464_v57 }
  0x61   :  { %v1720_v62 = vld [vmem:[%s3122_s1 + $0x2d8] sm:$0xf0]  ;;  %934 = vmatpush.bf16.msra.mxu1 %v1495_v48  ;;  %v2117_v63 = vld [vmem:[%s3122_s1 + $0x3cc] sm:$0xf]  ;;  %v1595_v2 = vor.u32 %v2053_v58, %v1592_v60 }
  0x62   :  { %947 = vmatpush.bf16.msra.mxu2 %v1623_v49  ;;  %v1848_v0 = vld [vmem:[%s3122_s1 + $0x3d8] sm:$0xf0]  ;;  %v1723_v3 = vor.u32 %v2085_v61, %v1720_v62  ;;  %v2017_v4 = vld [vmem:[%s3122_s1 + $0xac] sm:$0xf] }
  0x63   :  { %960 = vmatpush.bf16.msra.mxu3 %v1751_v52  ;;  %v1448_v5 = vld [vmem:[%s3122_s1 + $0xb8] sm:$0xf0]  ;;  %v2049_v6 = vld [vmem:[%s3122_s1 + $0x1ac] sm:$0xf]  ;;  %v1851_v7 = vor.u32 %v2117_v63, %v1848_v0  ;;  %922 = vmatmul.bf16.vlgmr.msra.gmra.mxu0 %v2508_v14 }
  0x64   :  { %966 = vmatpush.bf16.msrb.mxu0 %v1483_v53  ;;  %v1576_v8 = vld [vmem:[%s3122_s1 + $0x1b8] sm:$0xf0]  ;;  %v2081_v9 = vld [vmem:[%s3122_s1 + $0x2ac] sm:$0xf]  ;;  %935 = vmatmul.bf16.vlgmr.msra.gmra.mxu1 %v2513_v17  ;;  %v1451_v15 = vor.u32 %v2017_v4, %v1448_v5 }
  0x65   :  { %979 = vmatpush.bf16.msrb.mxu1 %v1611_v54  ;;  %948 = vmatmul.bf16.vlgmr.msra.gmra.mxu2 %v2506_v13  ;;  %v1704_v10 = vld [vmem:[%s3122_s1 + $0x2b8] sm:$0xf0]  ;;  %v2113_v11 = vld [vmem:[%s3122_s1 + $0x3ac] sm:$0xf]  ;;  %v1579_v18 = vor.u32 %v2049_v6, %v1576_v8 }
  0x66   :  { %992 = vmatpush.bf16.msrb.mxu2 %v1739_v55  ;;  %961 = vmatmul.bf16.vlgmr.msra.gmra.mxu3 %v2511_v16  ;;  %v1832_v12 = vld [vmem:[%s3122_s1 + $0x3b8] sm:$0xf0]  ;;  %v1707_v19 = vor.u32 %v2081_v9, %v1704_v10  ;;  %v2013_v20 = vld [vmem:[%s3122_s1 + $0x8c] sm:$0xf] }
  0x67   :  { %1005 = vmatpush.bf16.msrb.mxu3 %v1867_v59  ;;  %v1432_v21 = vld [vmem:[%s3122_s1 + $0x98] sm:$0xf0]  ;;  %v2045_v22 = vld [vmem:[%s3122_s1 + $0x18c] sm:$0xf]  ;;  %v1835_v23 = vor.u32 %v2113_v11, %v1832_v12 }
  0x68   :  { %967 = vmatpush.bf16.msrb.mxu0 %v1467_v1  ;;  %v1560_v24 = vld [vmem:[%s3122_s1 + $0x198] sm:$0xf0]  ;;  %v2077_v25 = vld [vmem:[%s3122_s1 + $0x28c] sm:$0xf]  ;;  %v1435_v29 = vor.u32 %v2013_v20, %v1432_v21 }
  0x69   :  { %980 = vmatpush.bf16.msrb.mxu1 %v1595_v2  ;;  %v1688_v26 = vld [vmem:[%s3122_s1 + $0x298] sm:$0xf0]  ;;  %v2109_v27 = vld [vmem:[%s3122_s1 + $0x38c] sm:$0xf]  ;;  %v1563_v30 = vor.u32 %v2045_v22, %v1560_v24 }
  0x6a   :  { %993 = vmatpush.bf16.msrb.mxu2 %v1723_v3  ;;  %v1816_v28 = vld [vmem:[%s3122_s1 + $0x398] sm:$0xf0]  ;;  %v1691_v31 = vor.u32 %v2077_v25, %v1688_v26  ;;  %v2009_v32 = vld [vmem:[%s3122_s1 + $0x6c] sm:$0xf]  ;;  %v2128_v25 = vld [vmem:[%s3124_s3 + $0x20] sm:$0xff] }
  0x6b   :  { %1006 = vmatpush.bf16.msrb.mxu3 %v1851_v7  ;;  %v1416_v33 = vld [vmem:[%s3122_s1 + $0x78] sm:$0xf0]  ;;  %v2041_v34 = vld [vmem:[%s3122_s1 + $0x16c] sm:$0xf]  ;;  %v1819_v35 = vor.u32 %v2109_v27, %v1816_v28  ;;  %v2136_v26 = vld [vmem:[%s3124_s3 + $0x60] sm:$0xff] }
  0x6c   :  { %968 = vmatpush.bf16.msrb.mxu0 %v1451_v15  ;;  %v1544_v36 = vld [vmem:[%s3122_s1 + $0x178] sm:$0xf0]  ;;  %v2073_v37 = vld [vmem:[%s3122_s1 + $0x26c] sm:$0xf]  ;;  %v1419_v41 = vor.u32 %v2009_v32, %v1416_v33 }
  0x6d   :  { %981 = vmatpush.bf16.msrb.mxu1 %v1579_v18  ;;  %v1672_v38 = vld [vmem:[%s3122_s1 + $0x278] sm:$0xf0]  ;;  %v2105_v39 = vld [vmem:[%s3122_s1 + $0x36c] sm:$0xf]  ;;  %v1547_v42 = vor.u32 %v2041_v34, %v1544_v36 }
  0x6e   :  { %994 = vmatpush.bf16.msrb.mxu2 %v1707_v19  ;;  %v1800_v40 = vld [vmem:[%s3122_s1 + $0x378] sm:$0xf0]  ;;  %v1675_v43 = vor.u32 %v2073_v37, %v1672_v38  ;;  %v2005_v44 = vld [vmem:[%s3122_s1 + $0x4c] sm:$0xf]  ;;  %v2132_v38 = vld [vmem:[%s3124_s3 + $0x40] sm:$0xff] }
  0x6f   :  { %1007 = vmatpush.bf16.msrb.mxu3 %v1835_v23  ;;  %v1400_v45 = vld [vmem:[%s3122_s1 + $0x58] sm:$0xf0]  ;;  %v2037_v46 = vld [vmem:[%s3122_s1 + $0x14c] sm:$0xf]  ;;  %v1803_v47 = vor.u32 %v2105_v39, %v1800_v40  ;;  %v2130_v23 = vld [vmem:[%s3124_s3 + $0x30] sm:$0xff] }
  0x70   :  { %969 = vmatpush.bf16.msrb.mxu0 %v1435_v29  ;;  %v1528_v48 = vld [vmem:[%s3122_s1 + $0x158] sm:$0xf0]  ;;  %v2069_v49 = vld [vmem:[%s3122_s1 + $0x24c] sm:$0xf]  ;;  %v1403_v53 = vor.u32 %v2005_v44, %v1400_v45  ;;  %v2124_v29 = vld [vmem:[%s3124_s3] sm:$0xff] }
  0x71   :  { %982 = vmatpush.bf16.msrb.mxu1 %v1563_v30  ;;  %v1656_v50 = vld [vmem:[%s3122_s1 + $0x258] sm:$0xf0]  ;;  %v2101_v51 = vld [vmem:[%s3122_s1 + $0x34c] sm:$0xf]  ;;  %v1531_v54 = vor.u32 %v2037_v46, %v1528_v48  ;;  %v3052_v30 = vld [vmem:[%s3123_s2] sm:$0xf] }
  0x72   :  { %995 = vmatpush.bf16.msrb.mxu2 %v1691_v31  ;;  %v1784_v52 = vld [vmem:[%s3122_s1 + $0x358] sm:$0xf0]  ;;  %v1659_v55 = vor.u32 %v2069_v49, %v1656_v50  ;;  %v2001_v56 = vld [vmem:[%s3122_s1 + $0x2c] sm:$0xf]  ;;  %v2134_v31 = vld [vmem:[%s3124_s3 + $0x50] sm:$0xff]  ;;  %v152_v32 = vperm.slane %v3052_v30, 0 }
  0x73   :  { %1008 = vmatpush.bf16.msrb.mxu3 %v1819_v35  ;;  %v1384_v57 = vld [vmem:[%s3122_s1 + $0x38] sm:$0xf0]  ;;  %v2033_v58 = vld [vmem:[%s3122_s1 + $0x12c] sm:$0xf]  ;;  %v1787_v59 = vor.u32 %v2101_v51, %v1784_v52  ;;  %v2144_v51 = vld [vmem:[%s3124_s3 + $0xa0] sm:$0xff] }
  0x74   :  { %970 = vmatpush.bf16.msrb.mxu0 %v1419_v41  ;;  %v1512_v60 = vld [vmem:[%s3122_s1 + $0x138] sm:$0xf0]  ;;  %v2065_v61 = vld [vmem:[%s3122_s1 + $0x22c] sm:$0xf]  ;;  %v1387_v1 = vor.u32 %v2001_v56, %v1384_v57 }
  0x75   :  { %983 = vmatpush.bf16.msrb.mxu1 %v1547_v42  ;;  %v1640_v62 = vld [vmem:[%s3122_s1 + $0x238] sm:$0xf0]  ;;  %v2097_v63 = vld [vmem:[%s3122_s1 + $0x32c] sm:$0xf]  ;;  %v1515_v2 = vor.u32 %v2033_v58, %v1512_v60  ;;  %v2146_v42 = vld [vmem:[%s3124_s3 + $0xb0] sm:$0xff] }
  0x76   :  { %996 = vmatpush.bf16.msrb.mxu2 %v1675_v43  ;;  %v1768_v0 = vld [vmem:[%s3122_s1 + $0x338] sm:$0xf0]  ;;  %v1643_v3 = vor.u32 %v2065_v61, %v1640_v62  ;;  %v1997_v4 = vld [vmem:[%s3122_s1 + $0xc] sm:$0xf]  ;;  %v2142_v58 = vld [vmem:[%s3124_s3 + $0x90] sm:$0xff] }
  0x77   :  { %1009 = vmatpush.bf16.msrb.mxu3 %v1803_v47  ;;  %v1368_v5 = vld [vmem:[%s3122_s1 + $0x18] sm:$0xf0]  ;;  %v2029_v6 = vld [vmem:[%s3122_s1 + $0x10c] sm:$0xf]  ;;  %v1771_v7 = vor.u32 %v2097_v63, %v1768_v0 }
  0x78   :  { %971 = vmatpush.bf16.msrb.mxu0 %v1403_v53  ;;  %v1496_v8 = vld [vmem:[%s3122_s1 + $0x118] sm:$0xf0]  ;;  %v2061_v9 = vld [vmem:[%s3122_s1 + $0x20c] sm:$0xf]  ;;  %v1371_v15 = vor.u32 %v1997_v4, %v1368_v5 }
  0x79   :  { %984 = vmatpush.bf16.msrb.mxu1 %v1531_v54  ;;  %v1624_v10 = vld [vmem:[%s3122_s1 + $0x218] sm:$0xf0]  ;;  %v2093_v11 = vld [vmem:[%s3122_s1 + $0x30c] sm:$0xf]  ;;  %v1499_v18 = vor.u32 %v2029_v6, %v1496_v8  ;;  %v153_v54 = vperm.slane %v3052_v30, 1 }
  0x7a   :  { %997 = vmatpush.bf16.msrb.mxu2 %v1659_v55  ;;  %v1752_v12 = vld [vmem:[%s3122_s1 + $0x318] sm:$0xf0]  ;;  %v1627_v19 = vor.u32 %v2061_v9, %v1624_v10  ;;  %v2129_v24 = vld [vmem:[%s3124_s3 + $0x28] sm:$0xff] }
  0x7b   :  { %1010 = vmatpush.bf16.msrb.mxu3 %v1787_v59  ;;  %v1755_v20 = vor.u32 %v2093_v11, %v1752_v12  ;;  %v2131_v21 = vld [vmem:[%s3124_s3 + $0x38] sm:$0xff]  ;;  %v2125_v27 = vld [vmem:[%s3124_s3 + $0x8] sm:$0xff]  ;;  %v2152_v11 = vld [vmem:[%s3124_s3 + $0xe0] sm:$0xff] }
  0x7c   :  { %972 = vmatpush.bf16.msrb.mxu0 %v1387_v1  ;;  %v2139_v22 = vld [vmem:[%s3124_s3 + $0x78] sm:$0xff]  ;;  %v2133_v33 = vld [vmem:[%s3124_s3 + $0x48] sm:$0xff] }
  0x7d   :  { %985 = vmatpush.bf16.msrb.mxu1 %v1515_v2  ;;  %v2135_v28 = vld [vmem:[%s3124_s3 + $0x58] sm:$0xff]  ;;  %v2145_v47 = vld [vmem:[%s3124_s3 + $0xa8] sm:$0xff] }
  0x7e   :  { %998 = vmatpush.bf16.msrb.mxu2 %v1643_v3  ;;  %v2147_v39 = vld [vmem:[%s3124_s3 + $0xb8] sm:$0xff]  ;;  %v2141_v61 = vld [vmem:[%s3124_s3 + $0x88] sm:$0xff]  ;;  %v2140_v3 = vld [vmem:[%s3124_s3 + $0x80] sm:$0xff] }
  0x7f   :  { %1011 = vmatpush.bf16.msrb.mxu3 %v1771_v7  ;;  %v2143_v53 = vld [vmem:[%s3124_s3 + $0x98] sm:$0xff]  ;;  %v2154_v7 = vld [vmem:[%s3124_s3 + $0xf0] sm:$0xff]  ;;  %v2153_v10 = vld [vmem:[%s3124_s3 + $0xe8] sm:$0xff] }
  0x80   :  { %973 = vmatpush.bf16.msrb.mxu0 %v1371_v15  ;;  %v2155_v5 = vld [vmem:[%s3124_s3 + $0xf8] sm:$0xff]  ;;  %v154_v15 = vperm.slane %v3052_v30, 2 }
  0x81   :  { %986 = vmatpush.bf16.msrb.mxu1 %v1499_v18  ;;  %v2151_v12 = vld [vmem:[%s3124_s3 + $0xd8] sm:$0xff]  ;;  %v2150_v18 = vld [vmem:[%s3124_s3 + $0xd0] sm:$0xff] }
  0x82   :  { %999 = vmatpush.bf16.msrb.mxu2 %v1627_v19 }
  0x83   :  { %1012 = vmatpush.bf16.msrb.mxu3 %v1755_v20  ;;  %974 = vmatmul.bf16.vlgmr.msrb.gmra.mxu0 %v2508_v14  ;;  %v2138_v14 = vld [vmem:[%s3124_s3 + $0x70] sm:$0xff] }
  0x84   :  { %1286 = vmatpush.bf16.msra.mxu0 %v2131_v21  ;;  %987 = vmatmul.bf16.vlgmr.msrb.gmra.mxu1 %v2513_v17  ;;  %v2126_v17 = vld [vmem:[%s3124_s3 + $0x10] sm:$0xff] }
  0x85   :  { %1299 = vmatpush.bf16.msra.mxu1 %v2139_v22  ;;  %1000 = vmatmul.bf16.vlgmr.msrb.gmra.mxu2 %v2506_v13  ;;  %v2127_v13 = vld [vmem:[%s3124_s3 + $0x18] sm:$0xff] }
  0x86   :  { %1013 = vmatmul.bf16.vlgmr.msrb.gmra.mxu3 %v2511_v16  ;;  %v2137_v16 = vld [vmem:[%s3124_s3 + $0x68] sm:$0xff]  ;;  %1312 = vmatpush.bf16.msra.mxu2 %v2147_v39 }
  0x87   :  { %1325 = vmatpush.bf16.msra.mxu3 %v2155_v5 }
  0x88   :  { %1287 = vmatpush.bf16.msra.mxu0 %v2130_v23  ;;  %v2149_v23 = vld [vmem:[%s3124_s3 + $0xc8] sm:$0xff] }
  0x89   :  { %1300 = vmatpush.bf16.msra.mxu1 %v2138_v14 }
  0x8a   :  { %1313 = vmatpush.bf16.msra.mxu2 %v2146_v42 }
  0x8b   :  { %1326 = vmatpush.bf16.msra.mxu3 %v2154_v7 }
  0x8c   :  { %1288 = vmatpush.bf16.msra.mxu0 %v2129_v24 }
  0x8d   :  { %1301 = vmatpush.bf16.msra.mxu1 %v2137_v16 }
  0x8e   :  { %1314 = vmatpush.bf16.msra.mxu2 %v2145_v47 }
  0x8f   :  { %1327 = vmatpush.bf16.msra.mxu3 %v2153_v10 }
  0x90   :  { %1289 = vmatpush.bf16.msra.mxu0 %v2128_v25 }
  0x91   :  { %1302 = vmatpush.bf16.msra.mxu1 %v2136_v26 }
  0x92   :  { %1315 = vmatpush.bf16.msra.mxu2 %v2144_v51 }
  0x93   :  { %1328 = vmatpush.bf16.msra.mxu3 %v2152_v11 }
  0x94   :  { %1290 = vmatpush.bf16.msra.mxu0 %v2127_v13 }
  0x95   :  { %1303 = vmatpush.bf16.msra.mxu1 %v2135_v28 }
  0x96   :  { %1316 = vmatpush.bf16.msra.mxu2 %v2143_v53 }
  0x97   :  { %1329 = vmatpush.bf16.msra.mxu3 %v2151_v12 }
  0x98   :  { %1291 = vmatpush.bf16.msra.mxu0 %v2126_v17  ;;  %v2148_v17 = vld [vmem:[%s3124_s3 + $0xc0] sm:$0xff] }
  0x99   :  { %1304 = vmatpush.bf16.msra.mxu1 %v2134_v31 }
  0x9a   :  { %1317 = vmatpush.bf16.msra.mxu2 %v2142_v58 }
  0x9b   :  { %1330 = vmatpush.bf16.msra.mxu3 %v2150_v18 }
  0x9c   :  { %1292 = vmatpush.bf16.msra.mxu0 %v2125_v27 }
  0x9d   :  { %1305 = vmatpush.bf16.msra.mxu1 %v2133_v33 }
  0x9e   :  { %1318 = vmatpush.bf16.msra.mxu2 %v2141_v61 }
  0x9f   :  { %1331 = vmatpush.bf16.msra.mxu3 %v2149_v23 }
  0xa0   :  { %1293 = vmatpush.bf16.msra.mxu0 %v2124_v29 }
  0xa1   :  { %1306 = vmatpush.bf16.msra.mxu1 %v2132_v38 }
  0xa2   :  { %1319 = vmatpush.bf16.msra.mxu2 %v2140_v3 }
  0xa3   :  { %1332 = vmatpush.bf16.msra.mxu3 %v2148_v17 }
  0xa7   :  { %v819_v34 = vpop.f32.mrf.mxu0 }
  0xa8   :  { %v820_v35 = vadd.f32 %v819_v34, %v152_v32  ;;  %v155_v32 = vperm.slane %v3052_v30, 3 }
  0xab   :  { %v832_v36 = vpop.f32.mrf.mxu1 }
  0xac   :  { %v833_v37 = vadd.f32 %v832_v36, %v820_v35 }
  0xae   :  { %v845_v40 = vpop.f32.mrf.mxu2 }
  0xaf   :  { %v846_v41 = vadd.f32 %v845_v40, %v833_v37  ;;  %v858_v43 = vpop.f32.mrf.mxu3  ;;  %v821_v45 = vpop.f32.mrf.mxu0 }
  0xb1   :  { %v859_v44 = vadd.f32 %v858_v43, %v846_v41 }
  0xb3   :  { %v834_v46 = vpop.f32.mrf.mxu1  ;;  %v1018_v48 = vmax.f32 %v859_v44, 0.0 }
  0xb5   :  { %v1022_v49 = vpack.c.bf16 %v1018_v48, %v1018_v48 }
  0xb6   :  { %v847_v50 = vpop.f32.mrf.mxu2 }
  0xb7   :  { %1294 = vmatmul.bf16.vlgmr.msra.gmra.mxu0 %v1022_v49  ;;  %v860_v52 = vpop.f32.mrf.mxu3 }
  0xb8   :  { %v2157_v52 = vld [vmem:[%s3125_s4] ss:$0 sm:$0xff] }
  0xc0   :  { %v871_v55 = vpop.f32.mrf.mxu0 }
  0xc1   :  { %v872_v56 = vadd.f32 %v871_v55, %v153_v54  ;;  %v884_v57 = vpop.f32.mrf.mxu1 }
  0xc3   :  { %v885_v59 = vadd.f32 %v884_v57, %v872_v56 }
  0xc8   :  { %v897_v60 = vpop.f32.mrf.mxu2  ;;  %v873_v1 = vpop.f32.mrf.mxu0 }
  0xc9   :  { %v898_v62 = vadd.f32 %v897_v60, %v885_v59  ;;  %v910_v63 = vpop.f32.mrf.mxu3  ;;  %v886_v2 = vpop.f32.mrf.mxu1 }
  0xcb   :  { %v911_v0 = vadd.f32 %v910_v63, %v898_v62 }
  0xcd   :  { %v1019_v4 = vmax.f32 %v911_v0, 0.0 }
  0xcf   :  { %v1023_v6 = vpack.c.bf16 %v1019_v4, %v1019_v4 }
  0xd0   :  { %v899_v8 = vpop.f32.mrf.mxu2 }
  0xd1   :  { %1307 = vmatmul.bf16.vlgmr.msra.gmra.mxu1 %v1023_v6  ;;  %v912_v9 = vpop.f32.mrf.mxu3 }
  0xe0   :  { %v923_v19 = vpop.f32.mrf.mxu0 }
  0xe1   :  { %v924_v20 = vadd.f32 %v923_v19, %v154_v15  ;;  %v936_v21 = vpop.f32.mrf.mxu1 }
  0xe3   :  { %v937_v22 = vadd.f32 %v936_v21, %v924_v20 }
  0xe8   :  { %v949_v24 = vpop.f32.mrf.mxu2  ;;  %v925_v16 = vpop.f32.mrf.mxu0 }
  0xe9   :  { %v950_v25 = vadd.f32 %v949_v24, %v937_v22  ;;  %v962_v14 = vpop.f32.mrf.mxu3  ;;  %v938_v26 = vpop.f32.mrf.mxu1 }
  0xeb   :  { %v963_v13 = vadd.f32 %v962_v14, %v950_v25 }
  0xed   :  { %v1020_v27 = vmax.f32 %v963_v13, 0.0 }
  0xef   :  { %v1024_v28 = vpack.c.bf16 %v1020_v27, %v1020_v27 }
  0xf0   :  { %v951_v29 = vpop.f32.mrf.mxu2 }
  0xf1   :  { %1320 = vmatmul.bf16.vlgmr.msra.gmra.mxu2 %v1024_v28  ;;  %v964_v31 = vpop.f32.mrf.mxu3 }
 0x100   :  { %v975_v33 = vpop.f32.mrf.mxu0 }
 0x101   :  { %v976_v34 = vadd.f32 %v975_v33, %v155_v32  ;;  %v988_v35 = vpop.f32.mrf.mxu1 }
 0x103   :  { %v989_v36 = vadd.f32 %v988_v35, %v976_v34 }
 0x108   :  { %v1001_v37 = vpop.f32.mrf.mxu2  ;;  %v977_v40 = vpop.f32.mrf.mxu0 }
 0x109   :  { %v1002_v38 = vadd.f32 %v1001_v37, %v989_v36  ;;  %v1014_v39 = vpop.f32.mrf.mxu3  ;;  %v990_v41 = vpop.f32.mrf.mxu1 }
 0x10b   :  { %v1015_v42 = vadd.f32 %v1014_v39, %v1002_v38 }
 0x10d   :  { %v1021_v43 = vmax.f32 %v1015_v42, 0.0 }
 0x10f   :  { %v1025_v44 = vpack.c.bf16 %v1021_v43, %v1021_v43 }
 0x110   :  { %v1003_v45 = vpop.f32.mrf.mxu2 }
 0x111   :  { %v1016_v46 = vpop.f32.mrf.mxu3  ;;  %1333 = vmatmul.bf16.vlgmr.msra.gmra.mxu3 %v1025_v44 }
 0x134   :  { %v1295_v47 = vpop.f32.mrf.mxu0 }
 0x135   :  { %v1296_v53 = vadd.f32 %v2157_v52, %v1295_v47 }
 0x13c   :  { %v1297_v48 = vpop.f32.mrf.mxu0 }
 0x14e   :  { %v1308_v49 = vpop.f32.mrf.mxu1 }
 0x14f   :  { %v1309_v54 = vadd.f32 %v1308_v49, %v1296_v53 }
 0x156   :  { %v1310_v50 = vpop.f32.mrf.mxu1 }
 0x174   :  { %v1321_v30 = vpop.f32.mrf.mxu2 }
 0x175   :  { %v1322_v55 = vadd.f32 %v1321_v30, %v1309_v54 }
 0x17c   :  { %v1323_v51 = vpop.f32.mrf.mxu2 }
 0x194   :  { %v1334_v56 = vpop.f32.mrf.mxu3 }
 0x195   :  { %v1335_v57 = vadd.f32 %v1334_v56, %v1322_v55 }
 0x197   :  { %1339 = vst.msk [vmem:[#allocation2] sm:$0x3] %vm1338_vm0, %v1335_v57 }
 0x198   :  { %1350 = dma.vmem_to_hbm [thread:$0]  %s1346_s29, 32, %s1348_s7, [#allocation3]  }
 0x19c   :  { %v1336_v58 = vpop.f32.mrf.mxu3 }
 0x19d   :  { %2182 = dma.done.wait [#allocation3], 32  }
 0x19e   :  { %2183 = vsyncadd [#allocation3], 4294967264 }
 0x19f   :  { %1355 = vsyncpa [#allocation3], 1 }

</bundles_post_ra>
